<compile_context>
chip_gen: v7x
topology: tpu7x:2x2x1
jax: 0.10.0
libtpu: 0.0.40
codegen_flags: <defaults>
</compile_context>

<pallas_src>
import functools

import jax
import jax.numpy as jnp
from jax import lax
from jax.experimental import pallas as pl
from jax.experimental.pallas import tpu as pltpu


# ----------------------------------------------------------------------------
# Kernel: one grid step == (batch element, row tile).
#   part1 = conv3x3(part1) * s1a          (9 flat-offset taps on the MXU)
#   h     = relu([part1 + b1a, part2*s1b + b1b])
#   y1    = relu(W1s @ h + b2)            (1x1 conv, channel-major output)
#   y2    = relu(W2s @ y1 + b3)
# ----------------------------------------------------------------------------
def _fasternet_kernel(xp_ref, x_ref, wc_ref, b1a_ref, s1b_ref, b1b_ref,
                      w1a_ref, w1b_ref, b2_ref, w2_ref, b3_ref, o_ref,
                      *, tile_h, width, width_p, x2_offset):
    cp = xp_ref.shape[3]
    lout = tile_h * width_p            # conv output length incl. 2 pad cols/row
    hwt = tile_h * width               # valid pixels in this row tile

    # --- PConv 3x3 over the full padded width: every tap (dh, dw) is a
    #     contiguous sublane-offset load (flat offset dh*Wp+dw) -> no strided
    #     window relayouts. Accumulate in f32 on the MXU.
    acc = jnp.zeros((lout, cp), jnp.float32)
    for dh in range(3):
        for dw in range(3):
            tap = xp_ref[0, 0, pl.ds(dh * width_p + dw, lout), :]
            acc = acc + jnp.dot(tap, wc_ref[dh * 3 + dw],
                                preferred_element_type=jnp.float32)

    # Drop the 2 junk pad columns of each row: ONE compaction (vs. 9 strided
    # slices in the previous version).
    acc = acc.reshape(tile_h, width_p, cp)[:, :width, :].reshape(hwt, cp)

    # --- BN1 (+ReLU).  The gamma/var scale of the conv half is already folded
    #     into wc; only the bias survives.  The passthrough half is read
    #     NCHW-native (channel-major) straight from the input block.
    h1 = jnp.maximum(acc + b1a_ref[...], 0.0)                       # (hwt, cp)
    x2 = x_ref[0, x2_offset:, :]                                    # (c2, hwt)
    h2 = jnp.maximum(x2 * s1b_ref[...] + b1b_ref[...], 0.0)         # (c2, hwt)

    # --- PWConv1 -> channel-major (Cout, hwt).
    # h1 is spatial-major; contract its channel (minor) dim against w1a's minor
    # dim (q @ k^T - style dot_general) so no explicit transpose is needed.
    # This dot stays f32 (K = cp is tiny; zero MXU cost either way).
    y1 = lax.dot_general(w1a_ref[...], h1,
                         dimension_numbers=(((1,), (1,)), ((), ())),
                         preferred_element_type=jnp.float32)
    y1 = y1 + jnp.dot(w1b_ref[...], h2.astype(w1b_ref.dtype),
                      preferred_element_type=jnp.float32)
    y1 = jnp.maximum(y1 + b2_ref[...], 0.0)                         # (Cout, hwt)

    # --- PWConv2
    y2 = jnp.dot(w2_ref[...], y1.astype(w2_ref.dtype),
                 preferred_element_type=jnp.float32)
    y2 = jnp.maximum(y2 + b3_ref[...], 0.0)                         # (Cout, hwt)

    # Lane-dense, channel-major store (hwt is a multiple of 128 or the full
    # plane): the wrapper only reshapes (B, Cout, H*W) -> (B, Cout, H, W).
    o_ref[0] = y2.astype(o_ref.dtype)


def _choose_tile_h(H, W):
    """Smallest row tile that divides H and gives a lane-dense (%128) flat
    extent of >= 128 pixels; falls back to the whole plane (block == full dim
    is always legal). Small tiles keep per-step VMEM well inside v7x's 64 MiB
    physical / v5e's 16 MiB default scoped budget."""
    for t in range(1, H + 1):
        if H % t == 0 and t * W >= 128 and (t * W) % 128 == 0:
            return t
    return H


def fasternet_block(x_nchw, params, *, compute_dtype=jnp.bfloat16):
    """x_nchw: (B, C, H, W) float32. Returns (B, Cout, H, W) float32."""
    B, C, H, W = x_nchw.shape
    Cp = int(params["Cp"])
    C2 = C - Cp
    assert 0 < Cp < C, "ratio must leave both channel groups non-empty"
    Cout = params["w2"].shape[1]

    Wp = W + 2
    tile_h = _choose_tile_h(H, W)
    n_h = H // tile_h
    hwt = tile_h * W
    l_slab = (tile_h + 3) * Wp          # tile_h + 2 halo rows + 1 spare row so
                                        # the dh=2,dw=2 flat tap stays in range

    # --- fold BN (inference mode) into per-channel scale/bias ---------------
    def fold(g, b, m, v, eps=1e-5):
        s = g / jnp.sqrt(v + eps)
        return s, b - m * s

    s1, b1 = fold(params["bn1_g"], params["bn1_b"], params["bn1_m"], params["bn1_v"])
    s2, b2 = fold(params["bn2_g"], params["bn2_b"], params["bn2_m"], params["bn2_v"])
    s3, b3 = fold(params["bn3_g"], params["bn3_b"], params["bn3_m"], params["bn3_v"])

    # --- weights with BN scales folded in (removes 3 full-plane VPU muls) ---
    wc = params["w_conv"].reshape(9, Cp, Cp) * s1[:Cp][None, None, :]
    wc = wc.astype(compute_dtype)
    w1t = params["w1"].T * s2[:, None]                    # (Cout, C), rows scaled
    w1a = w1t[:, :Cp].astype(jnp.float32)                 # stays f32 (see kernel)
    w1b = w1t[:, Cp:].astype(compute_dtype)
    w2t = (params["w2"].T * s3[:, None]).astype(compute_dtype)

    b1a = b1[:Cp].reshape(1, Cp).astype(jnp.float32)
    s1b = s1[Cp:].reshape(C2, 1).astype(jnp.float32)
    b1b = b1[Cp:].reshape(C2, 1).astype(jnp.float32)
    b2c = b2.reshape(Cout, 1).astype(jnp.float32)
    b3c = b3.reshape(Cout, 1).astype(jnp.float32)

    # --- activations ---------------------------------------------------------
    # Passthrough half: NCHW-native, zero wrapper layout work (free reshape).
    x_flat = x_nchw.reshape(B, C, H * W)
    # Conv half only: channels-last padded row-slabs with a 2-row halo so each
    # 3x3 tap is a flat sublane offset in the kernel.  In an NHWC end-to-end
    # model this reduces to a cheap pad + window view (no transpose).
    x1 = jnp.transpose(x_nchw[:, :Cp], (0, 2, 3, 1))                # (B,H,W,Cp)
    x1 = jnp.pad(x1, ((0, 0), (1, 2), (1, 1), (0, 0)))              # (B,H+3,Wp,Cp)
    slabs = jnp.stack(
        [x1[:, i * tile_h: i * tile_h + tile_h + 3] for i in range(n_h)], axis=1)
    slabs = slabs.reshape(B, n_h, l_slab, Cp).astype(compute_dtype)

    kernel = functools.partial(_fasternet_kernel, tile_h=tile_h, width=W,
                               width_p=Wp, x2_offset=Cp)

    flops = 2 * B * H * W * (9 * Cp * Cp + C * Cout + Cout * Cout)
    bytes_accessed = (slabs.size * slabs.dtype.itemsize
                      + x_flat.size * 4
                      + (wc.size + w1b.size + w2t.size) * wc.dtype.itemsize
                      + w1a.size * 4
                      + B * Cout * H * W * 4)

    out = pl.pallas_call(
        kernel,
        out_shape=jax.ShapeDtypeStruct((B, Cout, H * W), jnp.float32),
        grid=(B, n_h),
        in_specs=[
            pl.BlockSpec((1, 1, l_slab, Cp), lambda b, i: (b, i, 0, 0)),
            pl.BlockSpec((1, C, hwt), lambda b, i: (b, 0, i)),
            pl.BlockSpec((9, Cp, Cp), lambda b, i: (0, 0, 0)),
            pl.BlockSpec((1, Cp), lambda b, i: (0, 0)),
            pl.BlockSpec((C2, 1), lambda b, i: (0, 0)),
            pl.BlockSpec((C2, 1), lambda b, i: (0, 0)),
            pl.BlockSpec((Cout, Cp), lambda b, i: (0, 0)),
            pl.BlockSpec((Cout, C2), lambda b, i: (0, 0)),
            pl.BlockSpec((Cout, 1), lambda b, i: (0, 0)),
            pl.BlockSpec((Cout, Cout), lambda b, i: (0, 0)),
            pl.BlockSpec((Cout, 1), lambda b, i: (0, 0)),
        ],
        out_specs=pl.BlockSpec((1, Cout, hwt), lambda b, i: (b, 0, i)),
        compiler_params=pltpu.CompilerParams(
            dimension_semantics=("parallel", "parallel"),
            vmem_limit_bytes=32 * 1024 * 1024),
        cost_estimate=pl.CostEstimate(flops=flops, transcendentals=0,
                                      bytes_accessed=bytes_accessed),
    )(slabs, x_flat, wc, b1a, s1b, b1b, w1a, w1b, b2c, w2t, b3c)

    return out.reshape(B, Cout, H, W)


# ----------------------------------------------------------------------------
# Pure-JAX reference (f32, same math) for verification.
# ----------------------------------------------------------------------------
def fasternet_reference(x, params):
    Cp = params["Cp"]

    def fold(g, b, m, v, eps=1e-5):
        s = g / jnp.sqrt(v + eps)
        return s, b - m * s

    p1, p2 = x[:, :Cp], x[:, Cp:]
    p1 = lax.conv_general_dilated(
        p1, params["w_conv"], window_strides=(1, 1), padding="SAME",
        dimension_numbers=("NCHW", "HWIO", "NCHW"))
    y = jnp.concatenate([p1, p2], axis=1)

    s1, b1 = fold(params["bn1_g"], params["bn1_b"], params["bn1_m"], params["bn1_v"])
    y = jnp.maximum(y * s1[None, :, None, None] + b1[None, :, None, None], 0.0)

    y = jnp.einsum("bchw,co->bohw", y, params["w1"])
    s2, b2 = fold(params["bn2_g"], params["bn2_b"], params["bn2_m"], params["bn2_v"])
    y = jnp.maximum(y * s2[None, :, None, None] + b2[None, :, None, None], 0.0)

    y = jnp.einsum("bchw,co->bohw", y, params["w2"])
    s3, b3 = fold(params["bn3_g"], params["bn3_b"], params["bn3_m"], params["bn3_v"])
    y = jnp.maximum(y * s3[None, :, None, None] + b3[None, :, None, None], 0.0)
    return y


def make_params(key, in_channels, out_channels, ratio=0.5):
    Cp = int(in_channels * ratio)
    ks = jax.random.split(key, 12)
    return {
        "Cp": Cp,
        # conv3x3 weight in HWIO layout: (3, 3, Cp_in, Cp_out)
        "w_conv": jax.random.normal(ks[0], (3, 3, Cp, Cp), jnp.float32) * 0.2,
        # 1x1 conv weights as (Cin, Cout) matrices
        "w1": jax.random.normal(ks[1], (in_channels, out_channels), jnp.float32) * 0.2,
        "w2": jax.random.normal(ks[2], (out_channels, out_channels), jnp.float32) * 0.2,
        # BN params / running stats (deterministic, non-trivial)
        "bn1_g": 1.0 + 0.1 * jax.random.normal(ks[3], (in_channels,), jnp.float32),
        "bn1_b": 0.1 * jax.random.normal(ks[4], (in_channels,), jnp.float32),
        "bn1_m": 0.1 * jax.random.normal(ks[5], (in_channels,), jnp.float32),
        "bn1_v": 1.0 + 0.1 * jax.random.uniform(ks[6], (in_channels,), jnp.float32),
        "bn2_g": 1.0 + 0.1 * jax.random.normal(ks[7], (out_channels,), jnp.float32),
        "bn2_b": 0.1 * jax.random.normal(ks[8], (out_channels,), jnp.float32),
        "bn2_m": 0.1 * jax.random.normal(ks[9], (out_channels,), jnp.float32),
        "bn2_v": 1.0 + 0.1 * jax.random.uniform(ks[10], (out_channels,), jnp.float32),
        "bn3_g": jnp.ones((out_channels,), jnp.float32) * 0.9,
        "bn3_b": jnp.full((out_channels,), 0.05, jnp.float32),
        "bn3_m": jnp.full((out_channels,), 0.02, jnp.float32),
        "bn3_v": jnp.ones((out_channels,), jnp.float32) * 1.1,
    }


if __name__ == "__main__":
    key = jax.random.PRNGKey(0)
    k_x, k_p = jax.random.split(key)

    B, C_in, C_out, H, W = 2, 4, 8, 16, 16
    x = jax.random.normal(k_x, (B, C_in, H, W), jnp.float32)
    params = make_params(k_p, C_in, C_out, ratio=0.5)

    run = jax.jit(lambda xx: fasternet_block(xx, params))
    out = jax.block_until_ready(run(x))
    ref = jax.block_until_ready(jax.jit(lambda xx: fasternet_reference(xx, params))(x))

    assert out.shape == (B, C_out, H, W), out.shape
    max_err = float(jnp.max(jnp.abs(out - ref)))
    # bf16 matmul operands with f32 accumulation -> loosened tolerance.
    assert max_err < 5e-2, max_err

    print("KERNEL_OK")
</pallas_src>

<mosaic_0001>
module attributes {stable_mosaic.version = 11 : i64} {
  func.func @_fasternet_kernel(%arg0: i32, %arg1: i32, %arg2: memref<1x1x198x2xbf16, #tpu.memory_space<vmem>>, %arg3: memref<1x4x128xf32, #tpu.memory_space<vmem>>, %arg4: memref<9x2x2xbf16, #tpu.memory_space<vmem>>, %arg5: memref<1x2xf32, #tpu.memory_space<vmem>>, %arg6: memref<2x1xf32, #tpu.memory_space<vmem>>, %arg7: memref<2x1xf32, #tpu.memory_space<vmem>>, %arg8: memref<8x2xf32, #tpu.memory_space<vmem>>, %arg9: memref<8x2xbf16, #tpu.memory_space<vmem>>, %arg10: memref<8x1xf32, #tpu.memory_space<vmem>>, %arg11: memref<8x8xbf16, #tpu.memory_space<vmem>>, %arg12: memref<8x1xf32, #tpu.memory_space<vmem>>, %arg13: memref<1x8x128xf32, #tpu.memory_space<vmem>>) attributes {dimension_semantics = [#tpu.dimension_semantics<parallel>, #tpu.dimension_semantics<parallel>], iteration_bounds = array<i64: 2, 2>, scalar_prefetch = 0 : i64, scratch_operands = 0 : i64, tpu.core_type = #tpu.core_type<tc>, window_params = [{transform_indices = @transform_0, window_bounds = array<i64: 1, 1, 198, 2>}, {transform_indices = @transform_1, window_bounds = array<i64: 1, 4, 128>}, {pipeline_mode = #tpu.pipeline_mode<synchronous>, transform_indices = @transform_2, window_bounds = array<i64: 9, 2, 2>}, {pipeline_mode = #tpu.pipeline_mode<synchronous>, transform_indices = @transform_3, window_bounds = array<i64: 1, 2>}, {pipeline_mode = #tpu.pipeline_mode<synchronous>, transform_indices = @transform_4, window_bounds = array<i64: 2, 1>}, {pipeline_mode = #tpu.pipeline_mode<synchronous>, transform_indices = @transform_5, window_bounds = array<i64: 2, 1>}, {pipeline_mode = #tpu.pipeline_mode<synchronous>, transform_indices = @transform_6, window_bounds = array<i64: 8, 2>}, {pipeline_mode = #tpu.pipeline_mode<synchronous>, transform_indices = @transform_7, window_bounds = array<i64: 8, 2>}, {pipeline_mode = #tpu.pipeline_mode<synchronous>, transform_indices = @transform_8, window_bounds = array<i64: 8, 1>}, {pipeline_mode = #tpu.pipeline_mode<synchronous>, transform_indices = @transform_9, window_bounds = array<i64: 8, 8>}, {pipeline_mode = #tpu.pipeline_mode<synchronous>, transform_indices = @transform_10, window_bounds = array<i64: 8, 1>}, {transform_indices = @transform_11, window_bounds = array<i64: 1, 8, 128>}]} {
    %cst = arith.constant 0.000000e+00 : f32
    %0 = vector.broadcast %cst : f32 to vector<144x2xf32>
    %c0 = arith.constant 0 : index
    %c0_0 = arith.constant 0 : index
    %c0_1 = arith.constant 0 : index
    %c0_2 = arith.constant 0 : index
    %1 = vector.load %arg2[%c0, %c0_0, %c0_1, %c0_2] : memref<1x1x198x2xbf16, #tpu.memory_space<vmem>>, vector<1x1x144x2xbf16>
    %2 = vector.shape_cast %1 : vector<1x1x144x2xbf16> to vector<144x2xbf16>
    %c0_3 = arith.constant 0 : index
    %c0_4 = arith.constant 0 : index
    %c0_5 = arith.constant 0 : index
    %3 = vector.load %arg4[%c0_3, %c0_4, %c0_5] : memref<9x2x2xbf16, #tpu.memory_space<vmem>>, vector<1x2x2xbf16>
    %4 = vector.shape_cast %3 : vector<1x2x2xbf16> to vector<2x2xbf16>
    %cst_6 = arith.constant dense<0.000000e+00> : vector<144x2xf32>
    %5 = tpu.matmul %2, %4, %cst_6 {dimension_numbers = #tpu.dot_dimension_numbers<[1], [0], [0], [1], [0, 0, 1, 1], [], []>} : vector<144x2xbf16>, vector<2x2xbf16>, vector<144x2xf32> -> vector<144x2xf32>
    %6 = arith.addf %0, %5 : vector<144x2xf32>
    %c0_7 = arith.constant 0 : index
    %c0_8 = arith.constant 0 : index
    %c1 = arith.constant 1 : index
    %c0_9 = arith.constant 0 : index
    %7 = vector.load %arg2[%c0_7, %c0_8, %c1, %c0_9] : memref<1x1x198x2xbf16, #tpu.memory_space<vmem>>, vector<1x1x144x2xbf16>
    %8 = vector.shape_cast %7 : vector<1x1x144x2xbf16> to vector<144x2xbf16>
    %c1_10 = arith.constant 1 : index
    %c0_11 = arith.constant 0 : index
    %c0_12 = arith.constant 0 : index
    %9 = vector.load %arg4[%c1_10, %c0_11, %c0_12] : memref<9x2x2xbf16, #tpu.memory_space<vmem>>, vector<1x2x2xbf16>
    %10 = vector.shape_cast %9 : vector<1x2x2xbf16> to vector<2x2xbf16>
    %cst_13 = arith.constant dense<0.000000e+00> : vector<144x2xf32>
    %11 = tpu.matmul %8, %10, %cst_13 {dimension_numbers = #tpu.dot_dimension_numbers<[1], [0], [0], [1], [0, 0, 1, 1], [], []>} : vector<144x2xbf16>, vector<2x2xbf16>, vector<144x2xf32> -> vector<144x2xf32>
    %12 = arith.addf %6, %11 : vector<144x2xf32>
    %c0_14 = arith.constant 0 : index
    %c0_15 = arith.constant 0 : index
    %c2 = arith.constant 2 : index
    %c0_16 = arith.constant 0 : index
    %13 = vector.load %arg2[%c0_14, %c0_15, %c2, %c0_16] : memref<1x1x198x2xbf16, #tpu.memory_space<vmem>>, vector<1x1x144x2xbf16>
    %14 = vector.shape_cast %13 : vector<1x1x144x2xbf16> to vector<144x2xbf16>
    %c2_17 = arith.constant 2 : index
    %c0_18 = arith.constant 0 : index
    %c0_19 = arith.constant 0 : index
    %15 = vector.load %arg4[%c2_17, %c0_18, %c0_19] : memref<9x2x2xbf16, #tpu.memory_space<vmem>>, vector<1x2x2xbf16>
    %16 = vector.shape_cast %15 : vector<1x2x2xbf16> to vector<2x2xbf16>
    %cst_20 = arith.constant dense<0.000000e+00> : vector<144x2xf32>
    %17 = tpu.matmul %14, %16, %cst_20 {dimension_numbers = #tpu.dot_dimension_numbers<[1], [0], [0], [1], [0, 0, 1, 1], [], []>} : vector<144x2xbf16>, vector<2x2xbf16>, vector<144x2xf32> -> vector<144x2xf32>
    %18 = arith.addf %12, %17 : vector<144x2xf32>
    %c0_21 = arith.constant 0 : index
    %c0_22 = arith.constant 0 : index
    %c18 = arith.constant 18 : index
    %c0_23 = arith.constant 0 : index
    %19 = vector.load %arg2[%c0_21, %c0_22, %c18, %c0_23] : memref<1x1x198x2xbf16, #tpu.memory_space<vmem>>, vector<1x1x144x2xbf16>
    %20 = vector.shape_cast %19 : vector<1x1x144x2xbf16> to vector<144x2xbf16>
    %c3 = arith.constant 3 : index
    %c0_24 = arith.constant 0 : index
    %c0_25 = arith.constant 0 : index
    %21 = vector.load %arg4[%c3, %c0_24, %c0_25] : memref<9x2x2xbf16, #tpu.memory_space<vmem>>, vector<1x2x2xbf16>
    %22 = vector.shape_cast %21 : vector<1x2x2xbf16> to vector<2x2xbf16>
    %cst_26 = arith.constant dense<0.000000e+00> : vector<144x2xf32>
    %23 = tpu.matmul %20, %22, %cst_26 {dimension_numbers = #tpu.dot_dimension_numbers<[1], [0], [0], [1], [0, 0, 1, 1], [], []>} : vector<144x2xbf16>, vector<2x2xbf16>, vector<144x2xf32> -> vector<144x2xf32>
    %24 = arith.addf %18, %23 : vector<144x2xf32>
    %c0_27 = arith.constant 0 : index
    %c0_28 = arith.constant 0 : index
    %c19 = arith.constant 19 : index
    %c0_29 = arith.constant 0 : index
    %25 = vector.load %arg2[%c0_27, %c0_28, %c19, %c0_29] : memref<1x1x198x2xbf16, #tpu.memory_space<vmem>>, vector<1x1x144x2xbf16>
    %26 = vector.shape_cast %25 : vector<1x1x144x2xbf16> to vector<144x2xbf16>
    %c4 = arith.constant 4 : index
    %c0_30 = arith.constant 0 : index
    %c0_31 = arith.constant 0 : index
    %27 = vector.load %arg4[%c4, %c0_30, %c0_31] : memref<9x2x2xbf16, #tpu.memory_space<vmem>>, vector<1x2x2xbf16>
    %28 = vector.shape_cast %27 : vector<1x2x2xbf16> to vector<2x2xbf16>
    %cst_32 = arith.constant dense<0.000000e+00> : vector<144x2xf32>
    %29 = tpu.matmul %26, %28, %cst_32 {dimension_numbers = #tpu.dot_dimension_numbers<[1], [0], [0], [1], [0, 0, 1, 1], [], []>} : vector<144x2xbf16>, vector<2x2xbf16>, vector<144x2xf32> -> vector<144x2xf32>
    %30 = arith.addf %24, %29 : vector<144x2xf32>
    %c0_33 = arith.constant 0 : index
    %c0_34 = arith.constant 0 : index
    %c20 = arith.constant 20 : index
    %c0_35 = arith.constant 0 : index
    %31 = vector.load %arg2[%c0_33, %c0_34, %c20, %c0_35] : memref<1x1x198x2xbf16, #tpu.memory_space<vmem>>, vector<1x1x144x2xbf16>
    %32 = vector.shape_cast %31 : vector<1x1x144x2xbf16> to vector<144x2xbf16>
    %c5 = arith.constant 5 : index
    %c0_36 = arith.constant 0 : index
    %c0_37 = arith.constant 0 : index
    %33 = vector.load %arg4[%c5, %c0_36, %c0_37] : memref<9x2x2xbf16, #tpu.memory_space<vmem>>, vector<1x2x2xbf16>
    %34 = vector.shape_cast %33 : vector<1x2x2xbf16> to vector<2x2xbf16>
    %cst_38 = arith.constant dense<0.000000e+00> : vector<144x2xf32>
    %35 = tpu.matmul %32, %34, %cst_38 {dimension_numbers = #tpu.dot_dimension_numbers<[1], [0], [0], [1], [0, 0, 1, 1], [], []>} : vector<144x2xbf16>, vector<2x2xbf16>, vector<144x2xf32> -> vector<144x2xf32>
    %36 = arith.addf %30, %35 : vector<144x2xf32>
    %c0_39 = arith.constant 0 : index
    %c0_40 = arith.constant 0 : index
    %c36 = arith.constant 36 : index
    %c0_41 = arith.constant 0 : index
    %37 = vector.load %arg2[%c0_39, %c0_40, %c36, %c0_41] : memref<1x1x198x2xbf16, #tpu.memory_space<vmem>>, vector<1x1x144x2xbf16>
    %38 = vector.shape_cast %37 : vector<1x1x144x2xbf16> to vector<144x2xbf16>
    %c6 = arith.constant 6 : index
    %c0_42 = arith.constant 0 : index
    %c0_43 = arith.constant 0 : index
    %39 = vector.load %arg4[%c6, %c0_42, %c0_43] : memref<9x2x2xbf16, #tpu.memory_space<vmem>>, vector<1x2x2xbf16>
    %40 = vector.shape_cast %39 : vector<1x2x2xbf16> to vector<2x2xbf16>
    %cst_44 = arith.constant dense<0.000000e+00> : vector<144x2xf32>
    %41 = tpu.matmul %38, %40, %cst_44 {dimension_numbers = #tpu.dot_dimension_numbers<[1], [0], [0], [1], [0, 0, 1, 1], [], []>} : vector<144x2xbf16>, vector<2x2xbf16>, vector<144x2xf32> -> vector<144x2xf32>
    %42 = arith.addf %36, %41 : vector<144x2xf32>
    %c0_45 = arith.constant 0 : index
    %c0_46 = arith.constant 0 : index
    %c37 = arith.constant 37 : index
    %c0_47 = arith.constant 0 : index
    %43 = vector.load %arg2[%c0_45, %c0_46, %c37, %c0_47] : memref<1x1x198x2xbf16, #tpu.memory_space<vmem>>, vector<1x1x144x2xbf16>
    %44 = vector.shape_cast %43 : vector<1x1x144x2xbf16> to vector<144x2xbf16>
    %c7 = arith.constant 7 : index
    %c0_48 = arith.constant 0 : index
    %c0_49 = arith.constant 0 : index
    %45 = vector.load %arg4[%c7, %c0_48, %c0_49] : memref<9x2x2xbf16, #tpu.memory_space<vmem>>, vector<1x2x2xbf16>
    %46 = vector.shape_cast %45 : vector<1x2x2xbf16> to vector<2x2xbf16>
    %cst_50 = arith.constant dense<0.000000e+00> : vector<144x2xf32>
    %47 = tpu.matmul %44, %46, %cst_50 {dimension_numbers = #tpu.dot_dimension_numbers<[1], [0], [0], [1], [0, 0, 1, 1], [], []>} : vector<144x2xbf16>, vector<2x2xbf16>, vector<144x2xf32> -> vector<144x2xf32>
    %48 = arith.addf %42, %47 : vector<144x2xf32>
    %c0_51 = arith.constant 0 : index
    %c0_52 = arith.constant 0 : index
    %c38 = arith.constant 38 : index
    %c0_53 = arith.constant 0 : index
    %49 = vector.load %arg2[%c0_51, %c0_52, %c38, %c0_53] : memref<1x1x198x2xbf16, #tpu.memory_space<vmem>>, vector<1x1x144x2xbf16>
    %50 = vector.shape_cast %49 : vector<1x1x144x2xbf16> to vector<144x2xbf16>
    %c8 = arith.constant 8 : index
    %c0_54 = arith.constant 0 : index
    %c0_55 = arith.constant 0 : index
    %51 = vector.load %arg4[%c8, %c0_54, %c0_55] : memref<9x2x2xbf16, #tpu.memory_space<vmem>>, vector<1x2x2xbf16>
    %52 = vector.shape_cast %51 : vector<1x2x2xbf16> to vector<2x2xbf16>
    %cst_56 = arith.constant dense<0.000000e+00> : vector<144x2xf32>
    %53 = tpu.matmul %50, %52, %cst_56 {dimension_numbers = #tpu.dot_dimension_numbers<[1], [0], [0], [1], [0, 0, 1, 1], [], []>} : vector<144x2xbf16>, vector<2x2xbf16>, vector<144x2xf32> -> vector<144x2xf32>
    %54 = arith.addf %48, %53 : vector<144x2xf32>
    %55 = vector.shape_cast %54 : vector<144x2xf32> to vector<8x18x2xf32>
    %56 = vector.extract_strided_slice %55 {offsets = [0, 0, 0], sizes = [8, 16, 2], strides = [1, 1, 1]} : vector<8x18x2xf32> to vector<8x16x2xf32>
    %57 = vector.shape_cast %56 : vector<8x16x2xf32> to vector<128x2xf32>
    %c0_57 = arith.constant 0 : index
    %c0_58 = arith.constant 0 : index
    %58 = vector.load %arg5[%c0_57, %c0_58] : memref<1x2xf32, #tpu.memory_space<vmem>>, vector<1x2xf32>
    %59 = vector.broadcast %58 : vector<1x2xf32> to vector<128x2xf32>
    %60 = arith.addf %57, %59 : vector<128x2xf32>
    %cst_59 = arith.constant 0.000000e+00 : f32
    %61 = vector.broadcast %cst_59 : f32 to vector<128x2xf32>
    %62 = arith.maximumf %60, %61 : vector<128x2xf32>
    %c0_60 = arith.constant 0 : index
    %c2_61 = arith.constant 2 : index
    %c0_62 = arith.constant 0 : index
    %63 = vector.load %arg3[%c0_60, %c2_61, %c0_62] : memref<1x4x128xf32, #tpu.memory_space<vmem>>, vector<1x2x128xf32>
    %64 = vector.shape_cast %63 : vector<1x2x128xf32> to vector<2x128xf32>
    %c0_63 = arith.constant 0 : index
    %c0_64 = arith.constant 0 : index
    %65 = vector.load %arg6[%c0_63, %c0_64] : memref<2x1xf32, #tpu.memory_space<vmem>>, vector<2x1xf32>
    %66 = vector.broadcast %65 : vector<2x1xf32> to vector<2x128xf32>
    %67 = arith.mulf %64, %66 : vector<2x128xf32>
    %c0_65 = arith.constant 0 : index
    %c0_66 = arith.constant 0 : index
    %68 = vector.load %arg7[%c0_65, %c0_66] : memref<2x1xf32, #tpu.memory_space<vmem>>, vector<2x1xf32>
    %69 = vector.broadcast %68 : vector<2x1xf32> to vector<2x128xf32>
    %70 = arith.addf %67, %69 : vector<2x128xf32>
    %cst_67 = arith.constant 0.000000e+00 : f32
    %71 = vector.broadcast %cst_67 : f32 to vector<2x128xf32>
    %72 = arith.maximumf %70, %71 : vector<2x128xf32>
    %c0_68 = arith.constant 0 : index
    %c0_69 = arith.constant 0 : index
    %73 = vector.load %arg8[%c0_68, %c0_69] : memref<8x2xf32, #tpu.memory_space<vmem>>, vector<8x2xf32>
    %cst_70 = arith.constant dense<0.000000e+00> : vector<8x128xf32>
    %74 = tpu.matmul %73, %62, %cst_70 {dimension_numbers = #tpu.dot_dimension_numbers<[1], [1], [0], [0], [0, 0, 1, 0], [], []>} : vector<8x2xf32>, vector<128x2xf32>, vector<8x128xf32> -> vector<8x128xf32>
    %c0_71 = arith.constant 0 : index
    %c0_72 = arith.constant 0 : index
    %75 = vector.load %arg9[%c0_71, %c0_72] : memref<8x2xbf16, #tpu.memory_space<vmem>>, vector<8x2xbf16>
    %76 = arith.truncf %72 : vector<2x128xf32> to vector<2x128xbf16>
    %cst_73 = arith.constant dense<0.000000e+00> : vector<8x128xf32>
    %77 = tpu.matmul %75, %76, %cst_73 {dimension_numbers = #tpu.dot_dimension_numbers<[1], [0], [0], [1], [0, 0, 1, 1], [], []>} : vector<8x2xbf16>, vector<2x128xbf16>, vector<8x128xf32> -> vector<8x128xf32>
    %78 = arith.addf %74, %77 : vector<8x128xf32>
    %c0_74 = arith.constant 0 : index
    %c0_75 = arith.constant 0 : index
    %79 = vector.load %arg10[%c0_74, %c0_75] : memref<8x1xf32, #tpu.memory_space<vmem>>, vector<8x1xf32>
    %80 = vector.broadcast %79 : vector<8x1xf32> to vector<8x128xf32>
    %81 = arith.addf %78, %80 : vector<8x128xf32>
    %cst_76 = arith.constant 0.000000e+00 : f32
    %82 = vector.broadcast %cst_76 : f32 to vector<8x128xf32>
    %83 = arith.maximumf %81, %82 : vector<8x128xf32>
    %c0_77 = arith.constant 0 : index
    %c0_78 = arith.constant 0 : index
    %84 = vector.load %arg11[%c0_77, %c0_78] : memref<8x8xbf16, #tpu.memory_space<vmem>>, vector<8x8xbf16>
    %85 = arith.truncf %83 : vector<8x128xf32> to vector<8x128xbf16>
    %cst_79 = arith.constant dense<0.000000e+00> : vector<8x128xf32>
    %86 = tpu.matmul %84, %85, %cst_79 {dimension_numbers = #tpu.dot_dimension_numbers<[1], [0], [0], [1], [0, 0, 1, 1], [], []>} : vector<8x8xbf16>, vector<8x128xbf16>, vector<8x128xf32> -> vector<8x128xf32>
    %c0_80 = arith.constant 0 : index
    %c0_81 = arith.constant 0 : index
    %87 = vector.load %arg12[%c0_80, %c0_81] : memref<8x1xf32, #tpu.memory_space<vmem>>, vector<8x1xf32>
    %88 = vector.broadcast %87 : vector<8x1xf32> to vector<8x128xf32>
    %89 = arith.addf %86, %88 : vector<8x128xf32>
    %cst_82 = arith.constant 0.000000e+00 : f32
    %90 = vector.broadcast %cst_82 : f32 to vector<8x128xf32>
    %91 = arith.maximumf %89, %90 : vector<8x128xf32>
    %c0_83 = arith.constant 0 : index
    %c0_84 = arith.constant 0 : index
    %c0_85 = arith.constant 0 : index
    %92 = vector.load %arg13[%c0_83, %c0_84, %c0_85] : memref<1x8x128xf32, #tpu.memory_space<vmem>>, vector<1x8x128xf32>
    %93 = vector.shape_cast %92 : vector<1x8x128xf32> to vector<8x128xf32>
    %94 = vector.shape_cast %91 : vector<8x128xf32> to vector<1x8x128xf32>
    tpu.vector_store %arg13[%c0_83, %c0_84, %c0_85], %94 {strides = array<i32>} : memref<1x8x128xf32, #tpu.memory_space<vmem>>, vector<1x8x128xf32>,
    return
  }
  func.func @transform_0(%arg0: i32, %arg1: i32) -> (i32, i32, i32, i32) {
    %c0_i32 = arith.constant 0 : i32
    %c0_i32_0 = arith.constant 0 : i32
    %c0_i32_1 = arith.constant 0 : i32
    return %arg0, %arg1, %c0_i32, %c0_i32_0 : i32, i32, i32, i32
  }
  func.func @transform_1(%arg0: i32, %arg1: i32) -> (i32, i32, i32) {
    %c0_i32 = arith.constant 0 : i32
    %c0_i32_0 = arith.constant 0 : i32
    return %arg0, %c0_i32, %arg1 : i32, i32, i32
  }
  func.func @transform_2(%arg0: i32, %arg1: i32) -> (i32, i32, i32) {
    %c0_i32 = arith.constant 0 : i32
    %c0_i32_0 = arith.constant 0 : i32
    %c0_i32_1 = arith.constant 0 : i32
    %c0_i32_2 = arith.constant 0 : i32
    return %c0_i32, %c0_i32_0, %c0_i32_1 : i32, i32, i32
  }
  func.func @transform_3(%arg0: i32, %arg1: i32) -> (i32, i32) {
    %c0_i32 = arith.constant 0 : i32
    %c0_i32_0 = arith.constant 0 : i32
    %c0_i32_1 = arith.constant 0 : i32
    return %c0_i32, %c0_i32_0 : i32, i32
  }
  func.func @transform_4(%arg0: i32, %arg1: i32) -> (i32, i32) {
    %c0_i32 = arith.constant 0 : i32
    %c0_i32_0 = arith.constant 0 : i32
    %c0_i32_1 = arith.constant 0 : i32
    return %c0_i32, %c0_i32_0 : i32, i32
  }
  func.func @transform_5(%arg0: i32, %arg1: i32) -> (i32, i32) {
    %c0_i32 = arith.constant 0 : i32
    %c0_i32_0 = arith.constant 0 : i32
    %c0_i32_1 = arith.constant 0 : i32
    return %c0_i32, %c0_i32_0 : i32, i32
  }
  func.func @transform_6(%arg0: i32, %arg1: i32) -> (i32, i32) {
    %c0_i32 = arith.constant 0 : i32
    %c0_i32_0 = arith.constant 0 : i32
    %c0_i32_1 = arith.constant 0 : i32
    return %c0_i32, %c0_i32_0 : i32, i32
  }
  func.func @transform_7(%arg0: i32, %arg1: i32) -> (i32, i32) {
    %c0_i32 = arith.constant 0 : i32
    %c0_i32_0 = arith.constant 0 : i32
    %c0_i32_1 = arith.constant 0 : i32
    return %c0_i32, %c0_i32_0 : i32, i32
  }
  func.func @transform_8(%arg0: i32, %arg1: i32) -> (i32, i32) {
    %c0_i32 = arith.constant 0 : i32
    %c0_i32_0 = arith.constant 0 : i32
    %c0_i32_1 = arith.constant 0 : i32
    return %c0_i32, %c0_i32_0 : i32, i32
  }
  func.func @transform_9(%arg0: i32, %arg1: i32) -> (i32, i32) {
    %c0_i32 = arith.constant 0 : i32
    %c0_i32_0 = arith.constant 0 : i32
    %c0_i32_1 = arith.constant 0 : i32
    return %c0_i32, %c0_i32_0 : i32, i32
  }
  func.func @transform_10(%arg0: i32, %arg1: i32) -> (i32, i32) {
    %c0_i32 = arith.constant 0 : i32
    %c0_i32_0 = arith.constant 0 : i32
    %c0_i32_1 = arith.constant 0 : i32
    return %c0_i32, %c0_i32_0 : i32, i32
  }
  func.func @transform_11(%arg0: i32, %arg1: i32) -> (i32, i32, i32) {
    %c0_i32 = arith.constant 0 : i32
    %c0_i32_0 = arith.constant 0 : i32
    return %arg0, %c0_i32, %arg1 : i32, i32, i32
  }
}

</mosaic_0001>

<bundles_post_ra>
// kernel: _lambda_.1
= control target key start
LH: loop header
LB: loop body
LE: loop exit
PB: predicated region body
PF: predicated region fallthrough
CT: control target
= control target key end

     0   :  { %s4745_s17 = smov 0   ;;  %s4747_s18 = smov 0   ;;  %s5687_s0 = inlined_call_operand.vmem [shape: bf16[2,2,198,2], index: 0, kind: input, shape index: {}]   ;;  %s5688_s1 = inlined_call_operand.vmem [shape: f32[2,4,256], index: 1, kind: input, shape index: {}]   ;;  %s5689_s2 = inlined_call_operand.vmem [shape: bf16[9,2,2], index: 2, kind: input, shape index: {}]   ;;  %s5690_s3 = inlined_call_operand.vmem [shape: f32[1,2], index: 3, kind: input, shape index: {}]   ;;  %s5691_s4 = inlined_call_operand.vmem [shape: f32[2,1], index: 4, kind: input, shape index: {}]   ;;  %s5692_s5 = inlined_call_operand.vmem [shape: f32[2,1], index: 5, kind: input, shape index: {}]   ;;  %s5693_s6 = inlined_call_operand.vmem [shape: f32[8,2], index: 6, kind: input, shape index: {}]   ;;  %s5694_s7 = inlined_call_operand.vmem [shape: bf16[8,2], index: 7, kind: input, shape index: {}]   ;;  %s5695_s8 = inlined_call_operand.vmem [shape: f32[8,1], index: 8, kind: input, shape index: {}]   ;;  %s5696_s9 = inlined_call_operand.vmem [shape: bf16[8,8], index: 9, kind: input, shape index: {}]   ;;  %s5697_s10 = inlined_call_operand.vmem [shape: f32[8,1], index: 10, kind: input, shape index: {}]   ;;  %s5698_s11 = inlined_call_operand.vmem [shape: f32[2,8,256], index: 11, kind: output, shape index: {}]  }
   0x1   :  { %s4749_s19 = smov 0   ;;  %s4751_s20 = smov 0  }
   0x2   :  { %s4753_s21 = smov 0  }
   0x3 LB: > { %s30_s22 = sadd.s32 1, %s4670_s19  ;;  %s33_s23 = sadd.s32 1, %s4674_s20  ;;  %s4678_s21 = sphi %s4753_s21, %s21_s21   ;;  %s4674_s20 = sphi %s4751_s20, %s5704_s20   ;;  %s4670_s19 = sphi %s4749_s19, %s5703_s19   ;;  %s4666_s18 = sphi %s4747_s18, %s5702_s18   ;;  %s4662_s17 = sphi %s4745_s17, %s5701_s17  }
   0x4   : > { %p31_p0 = scmp.ge.s32.totalorder %s30_s22, 2  ;;  %p3602_p1 = scmp.ge.s32.totalorder %s4678_s21, 1 }
   0x5   : > { %p372_p2 = scmp.lt.s32.totalorder %s4678_s21, 5 }
   0x6   : > { %s5706_s22 = smov (%p31_p0, %s30_s22), 0  ;;  %s5708_s23 = smov (!%p31_p0, %s33_s23), %s4674_s20 }
   0x7   : > { %p373_p3 = pnand %p3602_p1, %p372_p2  ;;  %p35_p4 = scmp.ge.s32.totalorder %s5708_s23, 2 }
   0x8   : > { %v3608_v0 = vld [vmem:[%s5689_s2 + $0x1] sm:$0x1] (!%p373_p3)  ;;  %vm628_vm0 = vcmask (!%p373_p3), 1040384   ;;  %v3668_v1 = vld [vmem:[%s5689_s2 + $0x4] sm:$0x1] (!%p373_p3)  ;;  %v4680_v2 = vmov (!%p373_p3), 0.0  }
   0x9   : > { %s5710_s23 = smov (%p35_p4, %s5708_s23), 0  ;;  %376 = sbr.rel (%p373_p3) target bundleno = 1078 (0x436), region = 64 }
   0xa   : > { %3865 = vmatprep.subr.bf16.mxu1 (!%p373_p3), %v4680_v2  ;;  %4017 = vmatprep.subr.bf16.mxu0 (!%p373_p3), %v4680_v2  ;;  %v630_v3 = vsel (!%p373_p3), %vm628_vm0, %v3608_v0, 0  ;;  %v1407_v4 = vsel (!%p373_p3), %vm628_vm0, %v3668_v1, 0  ;;  %p427_p5 = scmp.lt.s32.totalorder (!%p373_p3), %s4666_s18, 1  ;;  %p429_p6 = scmp.lt.s32.totalorder (!%p373_p3), %s4662_s17, 1  ;;  %vm4681_vm1 = vmmov (!%p373_p3), 0   ;;  %vm600_vm4 = vcmask (!%p373_p3), 15360  }
   0xb   : > { %3866 = vmatpush3.bf16.msra.mxu1 (!%p373_p3), %v630_v3  ;;  %4018 = vmatpush3.bf16.msra.mxu0 (!%p373_p3), %v1407_v4  ;;  %vm523_vm2 = vsmask.f32 (!%p373_p3), 7424  ;;  %vm1289_vm3 = vsmask.f32 (!%p373_p3), 6400  ;;  %v471_v16 = vld [vmem:[%s5689_s2] sm:$0x1] (!%p373_p3)  ;;  %vm5499_vm9 = vmpackc.low (!%p373_p3), %vm600_vm4, %vm600_vm4 }
   0xc   : > { %3867 = vmatprep.mubr.msk.bf16.mxu1 (!%p373_p3), %vm4681_vm1, %v4680_v2  ;;  %4019 = vmatprep.mubr.msk.bf16.mxu0 (!%p373_p3), %vm4681_vm1, %v4680_v2  ;;  %v3679_v24 = vld [vmem:[%s5689_s2 + $0x5] sm:$0x1] (!%p373_p3)  ;;  %v756_v34 = vsel (!%p373_p3), %vm628_vm0, %v471_v16, 0  ;;  %vm1538_vm5 = vcmask (!%p373_p3), 1045504   ;;  %vm869_vm6 = vcmask (!%p373_p3), 1046528   ;;  %vm2207_vm8 = vcmask (!%p373_p3), 1044480  }
   0xd   : > { %4055 = vmatprep.subr.bf16.mxu0 (!%p373_p3), %v4680_v2  ;;  %3903 = vmatprep.subr.bf16.mxu1 (!%p373_p3), %v4680_v2  ;;  %v1586_v41 = vsel (!%p373_p3), %vm628_vm0, %v3679_v24, 0  ;;  %vm1958_vm7 = vsmask.f32 (!%p373_p3), 5376  ;;  %vm3445_vm10 = vcmask (!%p373_p3), 1043456   ;;  %vm3441_vm11 = vcmask (!%p373_p3), 64512  }
  0x10   : > { %s5712_s18 = smov (!%p427_p5, %s4666_s18), 1  ;;  %s5714_s17 = smov (!%p429_p6, %s4662_s17), 1 }
  0x11   : > { %s4557_s28 = smul.u32 50, %s5712_s18 }
  0x12   : > { %s4556_s29 = smul.u32 25, %s5714_s17 }
  0x14   : > { %s433_s30 = sadd.s32 %s4557_s28, %s4556_s29 }
  0x15   : > { %s3603_s12 = sshll.u32 %s433_s30, 2 }
  0x16   : > { %s4808_s15 = scalar_lea.vmem %s5687_s0, %s3603_s12 }
  0x17   : > { %v453_v5 = vld [vmem:[%s4808_s15] sm:$0xf]  ;;  %v4812_v6 = vld [vmem:[%s4808_s15 + $0x4] sm:$0xf]  ;;  %v4818_v8 = vld [vmem:[%s4808_s15 + $0x8] sm:$0xff]  }
  0x18   : > { %v4815_v7 = vcombine.low %v453_v5, %v4812_v6  ;;  %v1042_v9 = vld [vmem:[%s4808_s15 + $0x8] sm:$0xe]  ;;  %v4822_v10 = vld [vmem:[%s4808_s15 + $0xc] sm:$0xf]  ;;  %v532_v13 = vshll.u32 %v4818_v8, 16  ;;  %v4831_v15 = vld [vmem:[%s4808_s15 + $0x10] sm:$0xff]  }
  0x19   : > { %v4828_v14 = vcombine.low %v1042_v9, %v4822_v10  ;;  %v4837_v17 = vld [vmem:[%s4808_s15 + $0x10] sm:$0xff]   ;;  %v1299_v22 = vshrl.u32 %v4831_v15, 16  ;;  %v1302_v23 = vshll.u32 %v4831_v15, 16  ;;  %v536_v25 = vshrl.u32 %v4818_v8, 16  ;;  %v4848_v26 = vld [vmem:[%s4808_s15 + $0x18] sm:$0xff]   ;;  %v4857_v40 = vld [vmem:[%s4808_s15 + $0x20] sm:$0xff]  }
  0x1a   : > { %v525_v11 = vshrl.u32 %v4815_v7, 16  ;;  %v527_v12 = vshll.u32 %v4815_v7, 16  ;;  %v534_v19 = vrot.slane %v532_v13, 1  ;;  %v540_v30 = vshll.u32 %v4837_v17, 16  ;;  %v4863_v45 = vld [vmem:[%s4808_s15 + $0x18] sm:$0xff]   ;;  %v4879_v56 = vld [vmem:[%s4808_s15 + $0x28] sm:$0xff]  }
  0x1b   : > { %v1291_v20 = vshrl.u32 %v4828_v14, 16  ;;  %v1294_v21 = vshll.u32 %v4828_v14, 16  ;;  %v1301_v31 = vrot.slane %v1299_v22, 1  ;;  %v1304_v32 = vrot.slane %v1302_v23, 2  ;;  %v4884_v59 = vld [vmem:[%s4808_s15 + $0x20] sm:$0xff]   ;;  %v4895_v3 = vld [vmem:[%s4808_s15 + $0x28] sm:$0xff]  }
  0x1c   : > { %v529_v18 = vrot.slane %v527_v12, 1  ;;  %v1308_v33 = vshrl.u32 %v4848_v26, 16  ;;  %v1311_v37 = vshll.u32 %v4848_v26, 16  ;;  %v538_v42 = vor.u32 %v536_v25, %v534_v19  ;;  %v4898_v4 = vld [vmem:[%s4808_s15 + $0x30] sm:$0xff]   ;;  %v4916_v24 = vld [vmem:[%s4808_s15 + $0x48] sm:$0xff]  }
  0x1d   : > { %v1293_v28 = vrot.slane %v1291_v20, 1  ;;  %v1296_v29 = vrot.slane %v1294_v21, 2  ;;  %v1305_v38 = vor.u32 %v1304_v32, %v1301_v31  ;;  %v542_v43 = vrot.slane %v540_v30, 1  ;;  %v4913_v23 = vld [vmem:[%s4808_s15 + $0x30] sm:$0xff]   ;;  %v4922_v30 = vld [vmem:[%s4808_s15 + $0x38] sm:$0xff]  }
  0x1e   : > { %v530_v27 = vor.u32 %v529_v18, %v525_v11  ;;  %v1310_v39 = vrot.slane %v1308_v33, 1  ;;  %v1313_v44 = vrot.slane %v1311_v37, 2  ;;  %v1317_v48 = vshrl.u32 %v4857_v40, 16  ;;  %v4919_v25 = vld [vmem:[%s4808_s15 + $0x50] ss:$0 sps:$4 sm:$0x33]  }
  0x1f   : > { %v1297_v36 = vor.u32 %v1296_v29, %v1293_v28  ;;  %v1320_v49 = vshll.u32 %v4857_v40, 16  ;;  %v543_v50 = vsel %vm523_vm2, %v538_v42, %v542_v43  ;;  %v544_v51 = vshrl.u32 %v4837_v17, 16 }
  0x20   : > { %v535_v35 = vsel %vm523_vm2, %v530_v27, %v534_v19  ;;  %v1314_v47 = vor.u32 %v1313_v44, %v1310_v39  ;;  %v548_v52 = vshll.u32 %v4863_v45, 16  ;;  %v1319_v54 = vrot.slane %v1317_v48, 1 }
  0x21   : > { %3868 = vmatmul.mubr.msk.bf16.vlgmr.msra.gmra.mrb[0].mxu1 %vm600_vm4, %v535_v35  ;;  %v1306_v46 = vsel %vm1289_vm3, %v1297_v36, %v1305_v38  ;;  %v1322_v55 = vrot.slane %v1320_v49, 2  ;;  %v546_v57 = vor.u32 %v544_v51, %v542_v43  ;;  %v1326_v61 = vshrl.u32 %v4879_v56, 16 }
  0x22   : > { %3871 = vmatprep.mubr.msk.bf16.mxu1 %vm4681_vm1, %v4680_v2  ;;  %3904 = vmatpush3.bf16.msra.mxu1 %v756_v34  ;;  %v1315_v53 = vsel %vm1289_vm3, %v1305_v38, %v1314_v47  ;;  %v550_v58 = vrot.slane %v548_v52, 1  ;;  %v1329_v62 = vshll.u32 %v4879_v56, 16  ;;  %v552_v0 = vshrl.u32 %v4863_v45, 16 }
  0x23   : > { %3941 = vmatprep.subr.bf16.mxu1 %v4680_v2  ;;  %4020 = vmatmul.mubr.msk.bf16.vlgmr.msra.gmra.mrb[0].mxu0 %vm600_vm4, %v1306_v46  ;;  %v1323_v60 = vor.u32 %v1322_v55, %v1319_v54  ;;  %v556_v1 = vshll.u32 %v4884_v59, 16  ;;  %v1328_v9 = vrot.slane %v1326_v61, 1  ;;  %v564_v16 = vshll.u32 %v4895_v3, 16 }
  0x24   : > { %4056 = vmatpush3.bf16.msra.mxu0 %v1586_v41  ;;  %4023 = vmatprep.mubr.msk.bf16.mxu0 %vm4681_vm1, %v4680_v2  ;;  %v551_v63 = vsel %vm523_vm2, %v546_v57, %v550_v58  ;;  %v1331_v11 = vrot.slane %v1329_v62, 2  ;;  %v554_v12 = vor.u32 %v552_v0, %v550_v58  ;;  %v1335_v18 = vshrl.u32 %v4898_v4, 16  ;;  %v4966_v0 = vld [vmem:[%s4808_s15 + $0x40] sm:$0xff]  }
  0x25   : > { %4093 = vmatprep.subr.bf16.mxu0 %v4680_v2  ;;  %v1324_v5 = vsel %vm1289_vm3, %v1314_v47, %v1323_v60  ;;  %v558_v13 = vrot.slane %v556_v1, 1  ;;  %v1338_v19 = vshll.u32 %v4898_v4, 16  ;;  %v560_v22 = vshrl.u32 %v4884_v59, 16  ;;  %v4946_v47 = vld [vmem:[%s4808_s15 + $0x40] sm:$0xff]  }
  0x26   : > { %v1332_v20 = vor.u32 %v1331_v11, %v1328_v9  ;;  %v566_v27 = vrot.slane %v564_v16, 1  ;;  %v1337_v28 = vrot.slane %v1335_v18, 1  ;;  %v1554_v32 = vrot.slane %v4916_v24, 2 }
  0x27   : > { %v559_v21 = vsel %vm523_vm2, %v554_v12, %v558_v13  ;;  %v1340_v29 = vrot.slane %v1338_v19, 2  ;;  %v1556_v33 = vrot.slane %v4919_v25, 2  ;;  %v562_v34 = vor.u32 %v560_v22, %v558_v13  ;;  %v4981_v22 = vld [vmem:[%s4808_s15 + $0x48] ss:$0 sps:$4 sm:$0x11]  }
  0x28   : > { %v1333_v31 = vsel %vm1289_vm3, %v1323_v60, %v1332_v20  ;;  %v568_v36 = vshrl.u32 %v4895_v3, 16  ;;  %v572_v38 = vshll.u32 %v4913_v23, 16  ;;  %v1344_v39 = vshrl.u32 %v4922_v30, 16 }
  0x29   : > { %3872 = vmatmul.mubr.msk.bf16.gmra.mrb[4].mxu1 %vm600_vm4, %v543_v50  ;;  %v4933_v35 = vsel %vm1538_vm5, %v1554_v32, %v1556_v33  ;;  %v1341_v37 = vor.u32 %v1340_v29, %v1337_v28  ;;  %v1347_v41 = vshll.u32 %v4922_v30, 16  ;;  %v567_v42 = vsel %vm523_vm2, %v562_v34, %v566_v27  ;;  %v4951_v50 = vld [vmem:[%s4808_s15 + $0x38] sm:$0xff]  }
  0x2a   : > { %3875 = vmatprep.mubr.msk.bf16.mxu1 %vm4681_vm1, %v4680_v2  ;;  %v1346_v44 = vrot.slane %v1344_v39, 1  ;;  %v570_v48 = vor.u32 %v568_v36, %v566_v27  ;;  %v574_v49 = vrot.slane %v572_v38, 1  ;;  %v1353_v52 = vshrl.u32 %v4946_v47, 16 }
  0x2b   : > { %4024 = vmatmul.mubr.msk.bf16.gmra.mrb[4].mxu0 %vm600_vm4, %v1315_v53  ;;  %v1342_v43 = vsel %vm1289_vm3, %v1332_v20, %v1341_v37  ;;  %v1349_v46 = vrot.slane %v1347_v41, 2  ;;  %v1356_v53 = vshll.u32 %v4946_v47, 16  ;;  %v576_v55 = vshrl.u32 %v4913_v23, 16 }
  0x2c   : > { %4027 = vmatprep.mubr.msk.bf16.mxu0 %vm4681_vm1, %v4680_v2  ;;  %v575_v54 = vsel %vm523_vm2, %v570_v48, %v574_v49  ;;  %v580_v57 = vshll.u32 %v4951_v50, 16  ;;  %v1355_v60 = vrot.slane %v1353_v52, 1  ;;  %v1365_v9 = vshll.u32 %v4916_v24, 16  ;;  %v3637_v48 = vld [vmem:[%s5689_s2 + $0x2] sm:$0x1] }
  0x2d   : > { %v1350_v51 = vor.u32 %v1349_v46, %v1346_v44  ;;  %v1358_v61 = vrot.slane %v1356_v53, 2  ;;  %v578_v62 = vor.u32 %v576_v55, %v574_v49  ;;  %v584_v12 = vshrl.u32 %v4951_v50, 16  ;;  %v3690_v52 = vld [vmem:[%s5689_s2 + $0x6] sm:$0x1] }
  0x2e   : > { %v588_v13 = vshll.u32 %v4966_v0, 16  ;;  %v1367_v19 = vrot.slane %v1365_v9, 2  ;;  %v1371_v28 = vshrl.u32 %v4919_v25, 16  ;;  %v1374_v29 = vshll.u32 %v4919_v25, 16 }
  0x2f   : > { %v1351_v58 = vsel %vm1289_vm3, %v1341_v37, %v1350_v51  ;;  %v1359_v1 = vor.u32 %v1358_v61, %v1355_v60  ;;  %v592_v33 = vshrl.u32 %v4966_v0, 16  ;;  %v596_v34 = vshll.u32 %v4981_v22, 16 }
  0x30   : > { %v1373_v37 = vrot.slane %v1371_v28, 1  ;;  %v1376_v38 = vrot.slane %v1374_v29, 2  ;;  %v1542_v55 = vrot.slane %v4848_v26, 2  ;;  %v1546_v60 = vrot.slane %v4879_v56, 2 }
  0x31   : > { %3876 = vmatmul.mubr.msk.bf16.gmra.mrb[8].mxu1 %vm600_vm4, %v551_v63  ;;  %v582_v63 = vrot.slane %v580_v57, 1  ;;  %v1360_v16 = vsel %vm1289_vm3, %v1350_v51, %v1359_v1  ;;  %v598_v41 = vrot.slane %v596_v34, 1  ;;  %v1540_v51 = vrot.slane %v4831_v15, 2  ;;  %v5125_v34 = vld [vmem:[%s4808_s15 + $0x20] sm:$0xff]  }
  0x32   : > { %3879 = vmatprep.mubr.msk.bf16.mxu1 %vm4681_vm1, %v4680_v2  ;;  %v1377_v25 = vor.u32 %v1376_v38, %v1373_v37  ;;  %v1544_v57 = vrot.slane %v4857_v40, 2  ;;  %v1552_v9 = vrot.slane %v4946_v47, 2  ;;  %v873_v37 = vrot.slane %v4837_v17, 1 }
  0x33   : > { %4028 = vmatmul.mubr.msk.bf16.gmra.mrb[8].mxu0 %vm600_vm4, %v1324_v5  ;;  %v1362_v5 = vshrl.u32 %v4916_v24, 16  ;;  %v583_v11 = vsel %vm523_vm2, %v578_v62, %v582_v63  ;;  %v586_v20 = vor.u32 %v584_v12, %v582_v63  ;;  %v1548_v62 = vrot.slane %v4898_v4, 2 }
  0x34   : > { %4031 = vmatprep.mubr.msk.bf16.mxu0 %vm4681_vm1, %v4680_v2  ;;  %v1547_v61 = vsel %vm1538_vm5, %v1544_v57, %v1546_v60  ;;  %v1555_v12 = vsel %vm1538_vm5, %v1552_v9, %v1554_v32  ;;  %v5103_v32 = vld [vmem:[%s4808_s15 + $0x18] sm:$0xff]   ;;  %v1783_v38 = vrot.slane %v5125_v34, 2 }
  0x35   : > { %v1364_v18 = vrot.slane %v1362_v5, 1  ;;  %v1549_v63 = vsel %vm1538_vm5, %v1546_v60, %v1548_v62  ;;  %v1781_v29 = vrot.slane %v5103_v32, 2  ;;  %v5193_v60 = vld [vmem:[%s4808_s15 + $0x48] sm:$0xff]  }
  0x37   : > { %v1368_v27 = vor.u32 %v1367_v19, %v1364_v18  ;;  %v1711_v18 = vld [vmem:[%s4808_s15 + $0x10] sm:$0xc]  ;;  %v5095_v19 = vld [vmem:[%s4808_s15 + $0x14] sm:$0xf] }
  0x39   : > { %3880 = vmatmul.mubr.msk.bf16.gmra.mrb[12].mxu1 %vm600_vm4, %v559_v21  ;;  %v590_v21 = vrot.slane %v588_v13, 1  ;;  %v1369_v36 = vsel %vm1289_vm3, %v1359_v1, %v1368_v27  ;;  %v1378_v44 = vsel %vm1289_vm3, %v1368_v27, %v1377_v25  ;;  %v1550_v1 = vrot.slane %v4922_v30, 2  ;;  %v863_v13 = vld [vmem:[%s4808_s15] sm:$0xe] }
  0x3a   : > { %3883 = vmatprep.mubr.msk.bf16.mxu1 %vm4681_vm1, %v4680_v2  ;;  %v871_v27 = vrot.slane %v4818_v8, 1  ;;  %v875_v25 = vrot.slane %v4863_v45, 1 }
  0x3b   : > { %4032 = vmatmul.mubr.msk.bf16.gmra.mrb[12].mxu0 %vm600_vm4, %v1333_v31  ;;  %v591_v31 = vsel %vm523_vm2, %v586_v20, %v590_v21  ;;  %v594_v39 = vor.u32 %v592_v33, %v590_v21  ;;  %v1551_v5 = vsel %vm1538_vm5, %v1548_v62, %v1550_v1  ;;  %v5100_v20 = vcombine.low %v1711_v18, %v5095_v19 }
  0x3c   : > { %4035 = vmatprep.mubr.msk.bf16.mxu0 %vm4681_vm1, %v4680_v2  ;;  %v1793_v62 = vrot.slane %v5193_v60, 2 }
  0x3d   : > { %v1780_v28 = vrot.slane %v5100_v20, 2 }
  0x41   : > { %3884 = vmatmul.mubr.msk.bf16.gmra.mrb[16].mxu1 %vm600_vm4, %v567_v42  ;;  %v599_v42 = vsel %vm523_vm2, %v594_v39, %v598_v41  ;;  %v874_v39 = vsel %vm869_vm6, %v871_v27, %v873_v37  ;;  %v5141_v41 = vld [vmem:[%s4808_s15 + $0x28] sm:$0xff]  }
  0x42   : > { %3887 = vmatprep.mubr.msk.bf16.mxu1 %vm4681_vm1, %v4680_v2 }
  0x43   : > { %4036 = vmatmul.mubr.msk.bf16.gmra.mrb[16].mxu0 %vm600_vm4, %v1342_v43  ;;  %v1532_v43 = vld [vmem:[%s4808_s15 + $0x8] sm:$0xc] }
  0x44   : > { %4039 = vmatprep.mubr.msk.bf16.mxu0 %vm4681_vm1, %v4680_v2  ;;  %v3680_v46 = vcombine.low %v1532_v43, %v4822_v10  ;;  %v917_v10 = vsel %vm628_vm0, %v3637_v48, 0  ;;  %v876_v43 = vsel %vm869_vm6, %v873_v37, %v875_v25  ;;  %v1111_v37 = vrot.slane %v4828_v14, 1  ;;  %v3721_v14 = vld [vmem:[%s5689_s2 + $0x8] sm:$0x1] }
  0x46   : > { %v1539_v49 = vrot.slane %v3680_v46, 2  ;;  %v5154_v46 = vld [vmem:[%s4808_s15 + $0x30] sm:$0xff]  }
  0x47   : > { %v1787_v48 = vrot.slane %v5154_v46, 2 }
  0x48   : > { %v1541_v53 = vsel %vm1538_vm5, %v1539_v49, %v1540_v51 }
  0x49   : > { %3888 = vmatmul.mubr.msk.bf16.gmra.mrb[20].mxu1 %vm600_vm4, %v575_v54  ;;  %v1827_v54 = vsel %vm628_vm0, %v3690_v52, 0  ;;  %v5167_v52 = vld [vmem:[%s4808_s15 + $0x38] sm:$0xff]  }
  0x4a   : > { %3891 = vmatprep.mubr.msk.bf16.mxu1 %vm4681_vm1, %v4680_v2 }
  0x4b   : > { %4040 = vmatmul.mubr.msk.bf16.gmra.mrb[20].mxu0 %vm600_vm4, %v1351_v58  ;;  %v1545_v58 = vsel %vm1538_vm5, %v1542_v55, %v1544_v57 }
  0x4c   : > { %4043 = vmatprep.mubr.msk.bf16.mxu0 %vm4681_vm1, %v4680_v2 }
  0x51   : > { %3892 = vmatmul.mubr.msk.bf16.gmra.mrb[24].mxu1 %vm600_vm4, %v583_v11  ;;  %v1553_v11 = vsel %vm1538_vm5, %v1550_v1, %v1552_v9  ;;  %v5212_v9 = vld [vmem:[%s4808_s15 + $0x50] sm:$0xff]  }
  0x52   : > { %3895 = vmatprep.mubr.msk.bf16.mxu1 %vm4681_vm1, %v4680_v2 }
  0x53   : > { %4044 = vmatmul.mubr.msk.bf16.gmra.mrb[24].mxu0 %vm600_vm4, %v1360_v16  ;;  %v3638_v16 = vcombine.low %v863_v13, %v4812_v6  ;;  %v3648_v6 = vld [vmem:[%s5689_s2 + $0x3] sm:$0x1] }
  0x54   : > { %4047 = vmatprep.mubr.msk.bf16.mxu0 %vm4681_vm1, %v4680_v2  ;;  %v1158_v33 = vsel %vm628_vm0, %v3648_v6, 0  ;;  %v1963_v6 = vshll.u32 %v5100_v20, 16 }
  0x55   : > { %v870_v21 = vrot.slane %v3638_v16, 1  ;;  %v4636_v16 = vld [vmem:[%s4808_s15 + $0x58] ss:$0 sps:$4 sm:$0x33]  }
  0x59   : > { %3896 = vmatmul.mubr.msk.bf16.gmra.mrb[28].mxu1 %vm600_vm4, %v591_v31  ;;  %v872_v31 = vsel %vm869_vm6, %v870_v21, %v871_v27  ;;  %v1797_v21 = vrot.slane %v4636_v16, 2  ;;  %v1960_v27 = vshrl.u32 %v5100_v20, 16  ;;  %v1112_v20 = vrot.slane %v4831_v15, 1 }
  0x5a   : > { %3899 = vmatprep.mubr.msk.bf16.mxu1 %vm4681_vm1, %v4680_v2 }
  0x5b   : > { %4048 = vmatmul.mubr.msk.bf16.gmra.mrb[28].mxu0 %vm600_vm4, %v1369_v36 }
  0x5c   : > { %4051 = vmatprep.mubr.msk.bf16.mxu0 %vm4681_vm1, %v4680_v2 }
  0x61   : > { %3900 = vmatmul.mubr.msk.bf16.gmra.mrb[32].mxu1 %vm600_vm4, %v599_v42  ;;  %v1785_v42 = vrot.slane %v5141_v41, 2 }
  0x62   : > { %3905 = vmatprep.mubr.msk.bf16.mxu1 %vm4681_vm1, %v4680_v2 }
  0x63   : > { %4052 = vmatmul.mubr.msk.bf16.gmra.mrb[32].mxu0 %vm600_vm4, %v1378_v44  ;;  %v1786_v44 = vsel %vm1538_vm5, %v1783_v38, %v1785_v42 }
  0x64   : > { %4057 = vmatprep.mubr.msk.bf16.mxu0 %vm4681_vm1, %v4680_v2 }
  0x69   : > { %3906 = vmatmul.mubr.msk.bf16.vlgmr.msra.gmra.mrb[0].mxu1 %vm600_vm4, %v4815_v7  ;;  %v1543_v7 = vsel %vm1538_vm5, %v1540_v51, %v1542_v55  ;;  %v1788_v51 = vsel %vm1538_vm5, %v1785_v42, %v1787_v48  ;;  %v5180_v55 = vld [vmem:[%s4808_s15 + $0x40] sm:$0xff]   ;;  %v1113_v42 = vsel %vm869_vm6, %v1111_v37, %v1112_v20 }
  0x6a   : > { %3909 = vmatprep.mubr.msk.bf16.mxu1 %vm4681_vm1, %v4680_v2  ;;  %3942 = vmatpush3.bf16.msra.mxu1 %v917_v10  ;;  %v1789_v10 = vrot.slane %v5167_v52, 2 }
  0x6b   : > { %3979 = vmatprep.subr.bf16.mxu1 %v4680_v2  ;;  %4058 = vmatmul.mubr.msk.bf16.vlgmr.msra.gmra.mrb[0].mxu0 %vm600_vm4, %v1541_v53 }
  0x6c   : > { %4094 = vmatpush3.bf16.msra.mxu0 %v1827_v54  ;;  %4061 = vmatprep.mubr.msk.bf16.mxu0 %vm4681_vm1, %v4680_v2  ;;  %v1790_v54 = vsel %vm1538_vm5, %v1787_v48, %v1789_v10  ;;  %v1114_v48 = vrot.slane %v4848_v26, 1  ;;  %v1116_v26 = vrot.slane %v4857_v40, 1  ;;  %v1118_v40 = vrot.slane %v4879_v56, 1 }
  0x6d   : > { %4131 = vmatprep.subr.bf16.mxu0 %v4680_v2  ;;  %v1120_v56 = vrot.slane %v4898_v4, 1  ;;  %v1122_v4 = vrot.slane %v4922_v30, 1  ;;  %v1124_v30 = vrot.slane %v4946_v47, 1  ;;  %v5321_v47 = vld [vmem:[%s4808_s15 + $0x58] ss:$0 sps:$4 sm:$0x77]  }
  0x71   : > { %3910 = vmatmul.mubr.msk.bf16.gmra.mrb[4].mxu1 %vm600_vm4, %v4818_v8  ;;  %v3710_v8 = vld [vmem:[%s5689_s2 + $0x7] sm:$0x1] }
  0x72   : > { %3913 = vmatprep.mubr.msk.bf16.mxu1 %vm4681_vm1, %v4680_v2  ;;  %v2076_v36 = vsel %vm628_vm0, %v3710_v8, 0 }
  0x73   : > { %4062 = vmatmul.mubr.msk.bf16.gmra.mrb[4].mxu0 %vm600_vm4, %v1543_v7  ;;  %v1791_v7 = vrot.slane %v5180_v55, 2 }
  0x74   : > { %4065 = vmatprep.mubr.msk.bf16.mxu0 %vm4681_vm1, %v4680_v2 }
  0x79   : > { %3914 = vmatmul.mubr.msk.bf16.gmra.mrb[8].mxu1 %vm600_vm4, %v4837_v17  ;;  %v1784_v17 = vsel %vm1538_vm5, %v1781_v29, %v1783_v38 }
  0x7a   : > { %3917 = vmatprep.mubr.msk.bf16.mxu1 %vm4681_vm1, %v4680_v2 }
  0x7b   : > { %4066 = vmatmul.mubr.msk.bf16.gmra.mrb[8].mxu0 %vm600_vm4, %v1545_v58  ;;  %v1792_v58 = vsel %vm1538_vm5, %v1789_v10, %v1791_v7  ;;  %v1115_v10 = vsel %vm869_vm6, %v1112_v20, %v1114_v48 }
  0x7c   : > { %4069 = vmatprep.mubr.msk.bf16.mxu0 %vm4681_vm1, %v4680_v2 }
  0x81   : > { %3918 = vmatmul.mubr.msk.bf16.gmra.mrb[12].mxu1 %vm600_vm4, %v4863_v45  ;;  %v877_v45 = vrot.slane %v4884_v59, 1 }
  0x82   : > { %3921 = vmatprep.mubr.msk.bf16.mxu1 %vm4681_vm1, %v4680_v2 }
  0x83   : > { %4070 = vmatmul.mubr.msk.bf16.gmra.mrb[12].mxu0 %vm600_vm4, %v1547_v61  ;;  %v878_v49 = vsel %vm869_vm6, %v875_v25, %v877_v45  ;;  %v2920_v61 = vld [vmem:[%s5691_s4] sm:$0x3]  ;;  %v1980_v25 = vshll.u32 %v5125_v34, 16 }
  0x84   : > { %4073 = vmatprep.mubr.msk.bf16.mxu0 %vm4681_vm1, %v4680_v2 }
  0x89   : > { %3922 = vmatmul.mubr.msk.bf16.gmra.mrb[16].mxu1 %vm600_vm4, %v4884_v59  ;;  %v879_v59 = vrot.slane %v4895_v3, 1 }
  0x8a   : > { %3925 = vmatprep.mubr.msk.bf16.mxu1 %vm4681_vm1, %v4680_v2 }
  0x8b   : > { %4074 = vmatmul.mubr.msk.bf16.gmra.mrb[16].mxu0 %vm600_vm4, %v1549_v63  ;;  %v880_v53 = vsel %vm869_vm6, %v877_v45, %v879_v59  ;;  %v4682_v63 = vmov 0   ;;  %v2255_v45 = vsel %vm628_vm0, %v3721_v14, 0 }
  0x8c   : > { %4077 = vmatprep.mubr.msk.bf16.mxu0 %vm4681_vm1, %v4680_v2  ;;  %4603 = vset.pattern.permute.xlu0 %v4682_v63 }
  0x8d   : > { %2923 = vperm.xlu0 %4603, %v2920_v61   ;;  %4604 = vset.pattern.permute.xlu1 %v4682_v63 }
  0x91   : > { %3926 = vmatmul.mubr.msk.bf16.gmra.mrb[20].mxu1 %vm600_vm4, %v4895_v3  ;;  %v881_v3 = vrot.slane %v4913_v23, 1 }
  0x92   : > { %3929 = vmatprep.mubr.msk.bf16.mxu1 %vm4681_vm1, %v4680_v2 }
  0x93   : > { %4078 = vmatmul.mubr.msk.bf16.gmra.mrb[20].mxu0 %vm600_vm4, %v1551_v5  ;;  %v882_v57 = vsel %vm869_vm6, %v879_v59, %v881_v3  ;;  %v1794_v5 = vsel %vm1538_vm5, %v1791_v7, %v1793_v62  ;;  %v1989_v59 = vshll.u32 %v5141_v41, 16 }
  0x94   : > { %4081 = vmatprep.mubr.msk.bf16.mxu0 %vm4681_vm1, %v4680_v2 }
  0x99   : > { %3930 = vmatmul.mubr.msk.bf16.gmra.mrb[24].mxu1 %vm600_vm4, %v4913_v23  ;;  %v883_v23 = vrot.slane %v4951_v50, 1 }
  0x9a   : > { %3933 = vmatprep.mubr.msk.bf16.mxu1 %vm4681_vm1, %v4680_v2 }
  0x9b   : > { %4082 = vmatmul.mubr.msk.bf16.gmra.mrb[24].mxu0 %vm600_vm4, %v1553_v11  ;;  %v884_v1 = vsel %vm869_vm6, %v881_v3, %v883_v23  ;;  %v885_v11 = vrot.slane %v4966_v0, 1  ;;  %v1991_v3 = vrot.slane %v1989_v59, 3 }
  0x9c   : > { %4085 = vmatprep.mubr.msk.bf16.mxu0 %vm4681_vm1, %v4680_v2 }
  0x9d   : > { %v886_v13 = vsel %vm869_vm6, %v883_v23, %v885_v11  ;;  %v1117_v23 = vsel %vm869_vm6, %v1114_v48, %v1116_v26 }
  0xa1   : > { %3934 = vmatmul.mubr.msk.bf16.gmra.mrb[28].mxu1 %vm600_vm4, %v4951_v50  ;;  %v2927_v50 = vld [vmem:[%s5692_s5] sm:$0x3] }
  0xa2   : > { %3937 = vmatprep.mubr.msk.bf16.mxu1 %vm4681_vm1, %v4680_v2  ;;  %2930 = vperm.xlu0 %4603, %v2927_v50   ;;  %v2004_v50 = vshrl.u32 %v5167_v52, 16 }
  0xa3   : > { %4086 = vmatmul.mubr.msk.bf16.gmra.mrb[28].mxu0 %vm600_vm4, %v1555_v12  ;;  %v1795_v12 = vrot.slane %v5212_v9, 2 }
  0xa4   : > { %4089 = vmatprep.mubr.msk.bf16.mxu0 %vm4681_vm1, %v4680_v2 }
  0xa5   : > { %v1796_v18 = vsel %vm1538_vm5, %v1793_v62, %v1795_v12  ;;  %v1798_v8 = vsel %vm1538_vm5, %v1795_v12, %v1797_v21  ;;  %v2016_v21 = vshll.u32 %v5180_v55, 16 }
  0xa9   : > { %3938 = vmatmul.mubr.msk.bf16.gmra.mrb[32].mxu1 %vm600_vm4, %v4966_v0  ;;  %v887_v0 = vrot.slane %v4981_v22, 1  ;;  %v1962_v22 = vrot.slane %v1960_v27, 2  ;;  %v1121_v27 = vsel %vm869_vm6, %v1118_v40, %v1120_v56 }
  0xaa   : > { %3943 = vmatprep.mubr.msk.bf16.mxu1 %vm4681_vm1, %v4680_v2 }
  0xab   : > { %4090 = vmatmul.mubr.msk.bf16.gmra.mrb[32].mxu0 %vm600_vm4, %v4933_v35  ;;  %v1782_v35 = vsel %vm1538_vm5, %v1780_v28, %v1781_v29  ;;  %v1968_v28 = vshrl.u32 %v5103_v32, 16  ;;  %v1971_v29 = vshll.u32 %v5103_v32, 16 }
  0xac   : > { %4095 = vmatprep.mubr.msk.bf16.mxu0 %vm4681_vm1, %v4680_v2 }
  0xb1   : > { %3944 = vmatmul.mubr.msk.bf16.vlgmr.msra.gmra.mrb[0].mxu1 %vm600_vm4, %v872_v31  ;;  %v888_v31 = vsel %vm869_vm6, %v885_v11, %v887_v0  ;;  %v1119_v11 = vsel %vm869_vm6, %v1116_v26, %v1118_v40  ;;  %v2013_v0 = vshrl.u32 %v5180_v55, 16  ;;  %v2217_v40 = vrot.slane %v5167_v52, 3 }
  0xb2   : > { %3947 = vmatprep.mubr.msk.bf16.mxu1 %vm4681_vm1, %v4680_v2  ;;  %3980 = vmatpush3.bf16.msra.mxu1 %v1158_v33  ;;  %v1965_v33 = vrot.slane %v1963_v6, 3 }
  0xb3   : > { %4207 = vmatprep.subr.bf16.mxu1 %v4680_v2  ;;  %4096 = vmatmul.mubr.msk.bf16.vlgmr.msra.gmra.mrb[0].mxu0 %vm600_vm4, %v1782_v35  ;;  %v1970_v35 = vrot.slane %v1968_v28, 2  ;;  %v2015_v28 = vrot.slane %v2013_v0, 2 }
  0xb4   : > { %4132 = vmatpush3.bf16.msra.mxu0 %v2076_v36  ;;  %4099 = vmatprep.mubr.msk.bf16.mxu0 %vm4681_vm1, %v4680_v2  ;;  %v1973_v36 = vrot.slane %v1971_v29, 3  ;;  %v1966_v38 = vor.u32 %v1965_v33, %v1962_v22  ;;  %v2018_v29 = vrot.slane %v2016_v21, 3  ;;  %v2025_v22 = vshll.u32 %v5193_v60, 16 }
  0xb5   : > { %4169 = vmatprep.subr.bf16.mxu0 %v4680_v2  ;;  %v1123_v33 = vsel %vm869_vm6, %v1120_v56, %v1122_v4 }
  0xb6   : > { %v2027_v37 = vrot.slane %v2025_v22, 3 }
  0xb9   : > { %3948 = vmatmul.mubr.msk.bf16.gmra.mrb[4].mxu1 %vm600_vm4, %v874_v39  ;;  %v1974_v39 = vor.u32 %v1973_v36, %v1970_v35 }
  0xba   : > { %3951 = vmatprep.mubr.msk.bf16.mxu1 %vm4681_vm1, %v4680_v2 }
  0xbb   : > { %4100 = vmatmul.mubr.msk.bf16.gmra.mrb[4].mxu0 %vm600_vm4, %v1784_v17  ;;  %v1977_v17 = vshrl.u32 %v5125_v34, 16  ;;  %v1975_v15 = vsel %vm1958_vm7, %v1966_v38, %v1974_v39  ;;  %v2031_v38 = vshrl.u32 %v5212_v9, 16 }
  0xbc   : > { %4103 = vmatprep.mubr.msk.bf16.mxu0 %vm4681_vm1, %v4680_v2 }
  0xc1   : > { %3952 = vmatmul.mubr.msk.bf16.gmra.mrb[8].mxu1 %vm600_vm4, %v876_v43  ;;  %v1979_v43 = vrot.slane %v1977_v17, 2  ;;  %v1125_v17 = vsel %vm869_vm6, %v1122_v4, %v1124_v30 }
  0xc2   : > { %3955 = vmatprep.mubr.msk.bf16.mxu1 %vm4681_vm1, %v4680_v2 }
  0xc3   : > { %4104 = vmatmul.mubr.msk.bf16.gmra.mrb[8].mxu0 %vm600_vm4, %v1786_v44  ;;  %v1982_v44 = vrot.slane %v1980_v25, 3 }
  0xc4   : > { %4107 = vmatprep.mubr.msk.bf16.mxu0 %vm4681_vm1, %v4680_v2 }
  0xc9   : > { %3956 = vmatmul.mubr.msk.bf16.gmra.mrb[12].mxu1 %vm600_vm4, %v878_v49  ;;  %v1983_v49 = vor.u32 %v1982_v44, %v1979_v43  ;;  %v2040_v44 = vshrl.u32 %v5321_v47, 16 }
  0xca   : > { %3959 = vmatprep.mubr.msk.bf16.mxu1 %vm4681_vm1, %v4680_v2 }
  0xcb   : > { %4108 = vmatmul.mubr.msk.bf16.gmra.mrb[12].mxu0 %vm600_vm4, %v1788_v51  ;;  %v1986_v51 = vshrl.u32 %v5141_v41, 16  ;;  %v2042_v59 = vrot.slane %v2040_v44, 2 }
  0xcc   : > { %4111 = vmatprep.mubr.msk.bf16.mxu0 %vm4681_vm1, %v4680_v2 }
  0xd1   : > { %3960 = vmatmul.mubr.msk.bf16.gmra.mrb[16].mxu1 %vm600_vm4, %v880_v53  ;;  %v1984_v53 = vsel %vm1958_vm7, %v1974_v39, %v1983_v49  ;;  %v2034_v39 = vshll.u32 %v5212_v9, 16 }
  0xd2   : > { %3963 = vmatprep.mubr.msk.bf16.mxu1 %vm4681_vm1, %v4680_v2 }
  0xd3   : > { %4112 = vmatmul.mubr.msk.bf16.gmra.mrb[16].mxu0 %vm600_vm4, %v1790_v54  ;;  %v1988_v54 = vrot.slane %v1986_v51, 2  ;;  %v2036_v14 = vrot.slane %v2034_v39, 3 }
  0xd4   : > { %4115 = vmatprep.mubr.msk.bf16.mxu0 %vm4681_vm1, %v4680_v2 }
  0xd5   : > { %v1992_v7 = vor.u32 %v1991_v3, %v1988_v54  ;;  %v2201_v3 = vld [vmem:[%s4808_s15 + $0x10] sm:$0x8] }
  0xd7   : > { %v1993_v61 = vsel %vm1958_vm7, %v1983_v49, %v1992_v7  ;;  %v4637_v49 = vld [vmem:[%s4808_s15 + $0x50] ss:$0 sps:$4 sm:$0x11]   ;;  %s3604_s15 = sshll.u32 %s5712_s18, 1 }
  0xd8   : > { %s5368_s30 = sadd.s32 %s3604_s15, %s5714_s17 }
  0xd9   : > { %3964 = vmatmul.mubr.msk.bf16.gmra.mrb[20].mxu1 %vm600_vm4, %v882_v57  ;;  %v1995_v57 = vshrl.u32 %v5154_v46, 16  ;;  %s3605_s12 = sshll.u32 %s5368_s30, 2 }
  0xda   : > { %3967 = vmatprep.mubr.msk.bf16.mxu1 %vm4681_vm1, %v4680_v2  ;;  %s443_s16 = scalar_lea.vmem %s5688_s1, %s3605_s12 }
  0xdb   : > { %4116 = vmatmul.mubr.msk.bf16.gmra.mrb[20].mxu0 %vm600_vm4, %v1792_v58  ;;  %v1998_v58 = vshll.u32 %v5154_v46, 16  ;;  %v1997_v62 = vrot.slane %v1995_v57, 2 }
  0xdc   : > { %4119 = vmatprep.mubr.msk.bf16.mxu0 %vm4681_vm1, %v4680_v2 }
  0xdd   : > { %v2000_v63 = vrot.slane %v1998_v58, 3  ;;  %v2209_v58 = vrot.slane %v5103_v32, 3 }
  0xe1   : > { %3968 = vmatmul.mubr.msk.bf16.gmra.mrb[24].mxu1 %vm600_vm4, %v884_v1  ;;  %v2001_v1 = vor.u32 %v2000_v63, %v1997_v62  ;;  %v2213_v62 = vrot.slane %v5141_v41, 3  ;;  %v2215_v63 = vrot.slane %v5154_v46, 3  ;;  %v2919_v41 = vld [vmem:[%s443_s16 + $0x2] sm:$0x3]  ;;  %s3607_s16 = sshll.u32 %s5368_s30, 3 }
  0xe2   : > { %3971 = vmatprep.mubr.msk.bf16.mxu1 %vm4681_vm1, %v4680_v2  ;;  %s451_s24 = scalar_lea.vmem %s5698_s11, %s3607_s16 }
  0xe3   : > { %4120 = vmatmul.mubr.msk.bf16.gmra.mrb[24].mxu0 %vm600_vm4, %v1794_v5  ;;  %v2007_v5 = vshll.u32 %v5167_v52, 16  ;;  %v2002_v12 = vsel %vm1958_vm7, %v1992_v7, %v2001_v1  ;;  %v3722_v7 = vcombine.low %v2201_v3, %v5095_v19  ;;  %v2211_v19 = vrot.slane %v5125_v34, 3 }
  0xe4   : > { %4123 = vmatprep.mubr.msk.bf16.mxu0 %vm4681_vm1, %v4680_v2  ;;  %v2216_v34 = vsel %vm2207_vm8, %v2213_v62, %v2215_v63  ;;  %v2221_v52 = vrot.slane %v5193_v60, 3 }
  0xe5   : > { %v2009_v16 = vrot.slane %v2007_v5, 3  ;;  %v2208_v57 = vrot.slane %v3722_v7, 3  ;;  %v2214_v32 = vsel %vm2207_vm8, %v2211_v19, %v2213_v62 }
  0xe9   : > { %3972 = vmatmul.mubr.msk.bf16.gmra.mrb[28].mxu1 %vm600_vm4, %v886_v13  ;;  %v2006_v13 = vrot.slane %v2004_v50, 2  ;;  %v2218_v50 = vsel %vm2207_vm8, %v2215_v63, %v2217_v40 }
  0xea   : > { %3975 = vmatprep.mubr.msk.bf16.mxu1 %vm4681_vm1, %v4680_v2 }
  0xeb   : > { %4124 = vmatmul.mubr.msk.bf16.gmra.mrb[28].mxu0 %vm600_vm4, %v1796_v18  ;;  %v2010_v18 = vor.u32 %v2009_v16, %v2006_v13  ;;  %v2219_v13 = vrot.slane %v5180_v55, 3  ;;  %v2223_v55 = vrot.slane %v5212_v9, 3  ;;  %v2936_v9 = vld [vmem:[%s5694_s7] sm:$0xf] }
  0xec   : > { %4127 = vmatprep.mubr.msk.bf16.mxu0 %vm4681_vm1, %v4680_v2 }
  0xed   : > { %v2011_v6 = vsel %vm1958_vm7, %v2001_v1, %v2010_v18  ;;  %v2222_v0 = vsel %vm2207_vm8, %v2219_v13, %v2221_v52  ;;  %v2224_v21 = vsel %vm2207_vm8, %v2221_v52, %v2223_v55 }
  0xf1   : > { %3976 = vmatmul.mubr.msk.bf16.gmra.mrb[32].mxu1 %vm600_vm4, %v888_v31  ;;  %v2019_v31 = vor.u32 %v2018_v29, %v2015_v28 }
  0xf2   : > { %3981 = vmatprep.mubr.msk.bf16.mxu1 %vm4681_vm1, %v4680_v2 }
  0xf3   : > { %4128 = vmatmul.mubr.msk.bf16.gmra.mrb[32].mxu0 %vm600_vm4, %v1798_v8  ;;  %v2022_v8 = vshrl.u32 %v5193_v60, 16  ;;  %v2020_v35 = vsel %vm1958_vm7, %v2010_v18, %v2019_v31  ;;  %v2220_v18 = vsel %vm2207_vm8, %v2217_v40, %v2219_v13 }
  0xf4   : > { %4133 = vmatprep.mubr.msk.bf16.mxu0 %vm4681_vm1, %v4680_v2 }
  0xf5   : > { %v2024_v36 = vrot.slane %v2022_v8, 2 }
  0xf7   : > { %v2028_v20 = vor.u32 %v2027_v37, %v2024_v36 }
  0xf9   : > { %3982 = vmatmul.mubr.msk.bf16.vlgmr.msra.gmra.mrb[0].mxu1 %vm600_vm4, %v1113_v42  ;;  %v2029_v25 = vsel %vm1958_vm7, %v2019_v31, %v2028_v20  ;;  %v2033_v42 = vrot.slane %v2031_v38, 2 }
  0xfa   : > { %3985 = vmatprep.mubr.msk.bf16.mxu1 %vm4681_vm1, %v4680_v2 }
  0xfb   : > { %4134 = vmatmul.mubr.msk.bf16.vlgmr.msra.gmra.mrb[0].mxu0 %vm600_vm4, %v1975_v15  ;;  %v1126_v15 = vrot.slane %v4916_v24, 1  ;;  %v2037_v43 = vor.u32 %v2036_v14, %v2033_v42 }
  0xfc   : > { %4170 = vmatpush3.bf16.msra.mxu0 %v2255_v45  ;;  %4137 = vmatprep.mubr.msk.bf16.mxu0 %vm4681_vm1, %v4680_v2  ;;  %v2043_v45 = vshll.u32 %v5321_v47, 16 }
  0xfd   : > { %v1127_v48 = vsel %vm869_vm6, %v1124_v30, %v1126_v15  ;;  %v2038_v51 = vsel %vm1958_vm7, %v2028_v20, %v2037_v43 }
  0xfe   : > { %v2045_v24 = vrot.slane %v2043_v45, 3 }
 0x101   : > { %3986 = vmatmul.mubr.msk.bf16.gmra.mrb[4].mxu1 %vm600_vm4, %v1115_v10  ;;  %v1128_v10 = vrot.slane %v4637_v49, 1 }
 0x102   : > { %3989 = vmatprep.mubr.msk.bf16.mxu1 %vm4681_vm1, %v4680_v2 }
 0x103   : > { %4138 = vmatmul.mubr.msk.bf16.gmra.mrb[4].mxu0 %vm600_vm4, %v1984_v53  ;;  %v2046_v53 = vor.u32 %v2045_v24, %v2042_v59  ;;  %v1129_v54 = vsel %vm869_vm6, %v1126_v15, %v1128_v10  ;;  %v3425_v24 = vld [vmem:[%s5695_s8] sm:$0xff] }
 0x104   : > { %4141 = vmatprep.mubr.msk.bf16.mxu0 %vm4681_vm1, %v4680_v2  ;;  %3428 = vperm.xlu1 %4604, %v3425_v24  }
 0x105   : > { %v2047_v26 = vsel %vm1958_vm7, %v2037_v43, %v2046_v53  ;;  %v3435_v53 = vld [vmem:[%s5697_s10] sm:$0xff] }
 0x108   : > { %3438 = vperm.xlu1 %4604, %v3435_v53  }
 0x109   : > { %3990 = vmatmul.mubr.msk.bf16.gmra.mrb[8].mxu1 %vm600_vm4, %v1117_v23  ;;  %v2210_v23 = vsel %vm2207_vm8, %v2208_v57, %v2209_v58  ;;  %v4684_v57 = vmov 1983009808  }
 0x10a   : > { %3993 = vmatprep.mubr.msk.bf16.mxu1 %vm4681_vm1, %v4680_v2 }
 0x10b   : > { %4142 = vmatmul.mubr.msk.bf16.gmra.mrb[8].mxu0 %vm600_vm4, %v1993_v61  ;;  %v2212_v61 = vsel %vm2207_vm8, %v2209_v58, %v2211_v19  ;;  %v2400_v58 = vunpack.c.l.s4 %v4684_v57 }
 0x10c   : > { %4145 = vmatprep.mubr.msk.bf16.mxu0 %vm4681_vm1, %v4680_v2  ;;  %v2924_v46 = vpop.permute.xlu0 %2923 }
 0x10d   : > { %v2926_v1 = vmul.f32 %v2924_v46, %v2919_v41  ;;  %v3732_v41 = vld [vmem:[%s5690_s3] ss:$0 sm:$0xff] }
 0x10e   : > { %v2770_v46 = vcombine.high %v3732_v41, %v3732_v41 }
 0x111   : > { %3994 = vmatmul.mubr.msk.bf16.gmra.mrb[12].mxu1 %vm600_vm4, %v1119_v11 }
 0x112   : > { %3997 = vmatprep.mubr.msk.bf16.mxu1 %vm4681_vm1, %v4680_v2 }
 0x113   : > { %4146 = vmatmul.mubr.msk.bf16.gmra.mrb[12].mxu0 %vm600_vm4, %v2002_v12 }
 0x114   : > { %4149 = vmatprep.mubr.msk.bf16.mxu0 %vm4681_vm1, %v4680_v2 }
 0x119   : > { %3998 = vmatmul.mubr.msk.bf16.gmra.mrb[16].mxu1 %vm600_vm4, %v1121_v27  ;;  %v2225_v27 = vrot.slane %v5321_v47, 3 }
 0x11a   : > { %4001 = vmatprep.mubr.msk.bf16.mxu1 %vm4681_vm1, %v4680_v2 }
 0x11b   : > { %4150 = vmatmul.mubr.msk.bf16.gmra.mrb[16].mxu0 %vm600_vm4, %v2011_v6  ;;  %v2226_v60 = vsel %vm2207_vm8, %v2223_v55, %v2225_v27  ;;  %v4683_v6 = vmov 0.0|0.0  }
 0x11c   : > { %4153 = vmatprep.mubr.msk.bf16.mxu0 %vm4681_vm1, %v4680_v2 }
 0x121   : > { %4002 = vmatmul.mubr.msk.bf16.gmra.mrb[20].mxu1 %vm600_vm4, %v1123_v33  ;;  %v2931_v5 = vpop.permute.xlu0 %2930 }
 0x122   : > { %4005 = vmatprep.mubr.msk.bf16.mxu1 %vm4681_vm1, %v4680_v2  ;;  %v2933_v11 = vadd.f32 %v2931_v5, %v2926_v1 }
 0x123   : > { %4154 = vmatmul.mubr.msk.bf16.gmra.mrb[20].mxu0 %vm600_vm4, %v2020_v35 }
 0x124   : > { %4157 = vmatprep.mubr.msk.bf16.mxu0 %vm4681_vm1, %v4680_v2  ;;  %v2934_v12 = vmax.f32 %v2933_v11, 0.0 }
 0x126   : > { %v2937_v16 = vpack.c.bf16 %v2934_v12, %v2934_v12 }
 0x128   : > { %v2942_v56 = vsel %vm628_vm0, %v2937_v16, 0 }
 0x129   : > { %4006 = vmatmul.mubr.msk.bf16.gmra.mrb[24].mxu1 %vm600_vm4, %v1125_v17 }
 0x12a   : > { %4009 = vmatprep.mubr.msk.bf16.mxu1 %vm4681_vm1, %v4680_v2  ;;  %4208 = vmatpush3.bf16.msra.mxu1 %v2942_v56 }
 0x12b   : > { %4158 = vmatmul.mubr.msk.bf16.gmra.mrb[24].mxu0 %vm600_vm4, %v2029_v25  ;;  %4254 = vmatprep.subr.bf16.mxu1 %v4683_v6 }
 0x12c   : > { %4161 = vmatprep.mubr.msk.bf16.mxu0 %vm4681_vm1, %v4680_v2 }
 0x131   : > { %4010 = vmatmul.mubr.msk.bf16.gmra.mrb[28].mxu1 %vm600_vm4, %v1127_v48 }
 0x132   : > { %4013 = vmatprep.mubr.msk.bf16.mxu1 %vm4681_vm1, %v4680_v2 }
 0x133   : > { %4162 = vmatmul.mubr.msk.bf16.gmra.mrb[28].mxu0 %vm600_vm4, %v2038_v51 }
 0x134   : > { %4165 = vmatprep.mubr.msk.bf16.mxu0 %vm4681_vm1, %v4680_v2 }
 0x139   : > { %4014 = vmatmul.mubr.msk.bf16.gmra.mrb[32].mxu1 %vm600_vm4, %v1129_v54 }
 0x13a   : > { %4209 = vmatprep.mubr.msk.bf16.mxu1 %vm4681_vm1, %v4680_v2 }
 0x13b   : > { %4166 = vmatmul.mubr.msk.bf16.gmra.mrb[32].mxu0 %vm600_vm4, %v2047_v26 }
 0x13c   : > { %4171 = vmatprep.mubr.msk.bf16.mxu0 %vm4681_vm1, %v4680_v2 }
 0x141   : > { %4210 = vmatmul.mubr.msk.bf16.vlgmr.msra.gmra.mrb[36].mxu1 %vm600_vm4, %v2936_v9 }
 0x142   : > { %4245 = vmatprep.mubr.msk.f32.mxu1 %vm4681_vm1, %v4680_v2 }
 0x143   : > { %4172 = vmatmul.mubr.msk.bf16.vlgmr.msra.gmra.mrb[0].mxu0 %vm600_vm4, %v2210_v23  ;;  %v2402_v23 = vlaneseq }
 0x144   : > { %4175 = vmatprep.mubr.msk.bf16.mxu0 %vm4681_vm1, %v4680_v2 }
 0x145   : > { %v2403_v63 = vshrl.u32 %v2402_v23, 7 }
 0x14b   : > { %4176 = vmatmul.mubr.msk.bf16.gmra.mrb[4].mxu0 %vm600_vm4, %v2212_v61 }
 0x14c   : > { %4179 = vmatprep.mubr.msk.bf16.mxu0 %vm4681_vm1, %v4680_v2 }
 0x153   : > { %4180 = vmatmul.mubr.msk.bf16.gmra.mrb[8].mxu0 %vm600_vm4, %v2214_v32  ;;  %v2401_v32 = vunpack.c.0.s8 %v2400_v58 }
 0x154   : > { %4183 = vmatprep.mubr.msk.bf16.mxu0 %vm4681_vm1, %v4680_v2 }
 0x155   : > { %v5450_v40 = vsub.s32 %v2401_v32, %v2403_v63 }
 0x157   : > { %v5453_v1 = vrot.slane %v3732_v41, %v5450_v40  ;;  %v5456_v5 = vrot.slane %v2770_v46, %v5450_v40 }
 0x159   : > { %v5465_v55 = vcombine.high %v5456_v5, %v5456_v5 }
 0x15b   : > { %4184 = vmatmul.mubr.msk.bf16.gmra.mrb[12].mxu0 %vm600_vm4, %v2216_v34 }
 0x15c   : > { %4187 = vmatprep.mubr.msk.bf16.mxu0 %vm4681_vm1, %v4680_v2 }
 0x163   : > { %4188 = vmatmul.mubr.msk.bf16.gmra.mrb[16].mxu0 %vm600_vm4, %v2218_v50 }
 0x164   : > { %4191 = vmatprep.mubr.msk.bf16.mxu0 %vm4681_vm1, %v4680_v2 }
 0x16b   : > { %4192 = vmatmul.mubr.msk.bf16.gmra.mrb[20].mxu0 %vm600_vm4, %v2220_v18  ;;  %v5461_v18 = vcombine.high %v5453_v1, %v5453_v1 }
 0x16c   : > { %4195 = vmatprep.mubr.msk.bf16.mxu0 %vm4681_vm1, %v4680_v2 }
 0x173   : > { %4196 = vmatmul.mubr.msk.bf16.gmra.mrb[24].mxu0 %vm600_vm4, %v2222_v0 }
 0x174   : > { %4199 = vmatprep.mubr.msk.bf16.mxu0 %vm4681_vm1, %v4680_v2 }
 0x17b   : > { %4200 = vmatmul.mubr.msk.bf16.gmra.mrb[28].mxu0 %vm600_vm4, %v2224_v21 }
 0x17c   : > { %4203 = vmatprep.mubr.msk.bf16.mxu0 %vm4681_vm1, %v4680_v2 }
 0x183   : > { %4204 = vmatmul.mubr.msk.bf16.gmra.mrb[32].mxu0 %vm600_vm4, %v2226_v60 }
 0x1cc   : > { %v1194_v28 = vpop.f32.mrb[0].mxu1 }
 0x1cd   : > { %v3983_v29 = vpop.f32.mrb[1].mxu1 }
 0x1ce   : > { %v1197_v4 = vpop.f32.mrb[2].mxu1 }
 0x1cf   : > { %v3984_v31 = vpop.f32.mrb[3].mxu1 }
 0x1d4   : > { %v5409_v8 = vpop.f32.mrb[4].mxu1 }
 0x1d5   : > { %v3987_v22 = vpop.f32.mrb[5].mxu1 }
 0x1d6   : > { %v5411_v33 = vpop.f32.mrb[6].mxu1 }
 0x1d7   : > { %v3988_v35 = vpop.f32.mrb[7].mxu1 }
 0x1dc   : > { %v5413_v36 = vpop.f32.mrb[8].mxu1 }
 0x1dd   : > { %v3991_v37 = vpop.f32.mrb[9].mxu1 }
 0x1de   : > { %v5415_v30 = vpop.f32.mrb[10].mxu1 }
 0x1df   : > { %v3992_v20 = vpop.f32.mrb[11].mxu1 }
 0x1e4   : > { %v5417_v38 = vpop.f32.mrb[12].mxu1 }
 0x1e5   : > { %v3995_v39 = vpop.f32.mrb[13].mxu1 }
 0x1e6   : > { %v5419_v17 = vpop.f32.mrb[14].mxu1 }
 0x1e7   : > { %v3996_v25 = vpop.f32.mrb[15].mxu1 }
 0x1ec   : > { %v5421_v42 = vpop.f32.mrb[16].mxu1 }
 0x1ed   : > { %v3999_v14 = vpop.f32.mrb[17].mxu1 }
 0x1ee   : > { %v5423_v47 = vpop.f32.mrb[18].mxu1 }
 0x1ef   : > { %v4000_v15 = vpop.f32.mrb[19].mxu1 }
 0x1f4   : > { %v5425_v43 = vpop.f32.mrb[20].mxu1 }
 0x1f5   : > { %v4003_v44 = vpop.f32.mrb[21].mxu1 }
 0x1f6   : > { %v5427_v45 = vpop.f32.mrb[22].mxu1 }
 0x1f7   : > { %v4004_v48 = vpop.f32.mrb[23].mxu1 }
 0x1fc   : > { %v5429_v49 = vpop.f32.mrb[24].mxu1 }
 0x1fd   : > { %v4007_v51 = vpop.f32.mrb[25].mxu1 }
 0x1fe   : > { %v5431_v59 = vpop.f32.mrb[26].mxu1 }
 0x1ff   : > { %v4008_v10 = vpop.f32.mrb[27].mxu1 }
 0x204   : > { %v5439_v54 = vpop.f32.mrb[28].mxu1 }
 0x205   : > { %v4011_v3 = vpop.f32.mrb[29].mxu1 }
 0x206   : > { %v5441_v26 = vpop.f32.mrb[30].mxu1 }
 0x207   : > { %v4012_v7 = vpop.f32.mrb[31].mxu1 }
 0x20c   : > { %v5443_v19 = vpop.f32.mrb[32].mxu1 }
 0x20d   : > { %v4015_v61 = vpop.f32.mrb[33].mxu1 }
 0x20e   : > { %v5445_v62 = vpop.f32.mrb[34].mxu1 }
 0x20f   : > { %v4016_v34 = vpop.f32.mrb[35].mxu1 }
 0x216   : > { %v2291_v50 = vpop.f32.mrb[0].mxu0 }
 0x217   : > { %v4286_v11 = vadd.f32 %v2291_v50, %v1194_v28  ;;  %v4173_v12 = vpop.f32.mrb[1].mxu0 }
 0x218   : > { %v2294_v13 = vpop.f32.mrb[2].mxu0 }
 0x219   : > { %v2398_v16 = vcombine.high %v4286_v11, %v4286_v11  ;;  %v2405_v56 = vrot.slane %v4286_v11, %v5450_v40  ;;  %v4287_v52 = vadd.f32 %v2294_v13, %v1197_v4  ;;  %v4174_v0 = vpop.f32.mrb[3].mxu0 }
 0x21b   : > { %v2412_v21 = vrot.slane %v2398_v16, %v5450_v40  ;;  %v2413_v27 = vcombine.high %v2405_v56, %v2405_v56  ;;  %v2791_v60 = vadd.f32 %v5453_v1, %v2405_v56  ;;  %v2415_v9 = vcombine.high %v4287_v52, %v4287_v52 }
 0x21c   : > { %v2422_v28 = vrot.slane %v4287_v52, %v5450_v40 }
 0x21d   : > { %v2414_v29 = vcombine.high %v2412_v21, %v2412_v21  ;;  %v2792_v31 = vadd.f32 %v5461_v18, %v2413_v27  ;;  %v2793_v22 = vadd.f32 %v5456_v5, %v2412_v21  ;;  %v2855_v35 = vmax.f32 %v2791_v60, 0.0 }
 0x21e   : > { %v2429_v4 = vrot.slane %v2415_v9, %v5450_v40  ;;  %v2430_v37 = vcombine.high %v2422_v28, %v2422_v28  ;;  %v2795_v20 = vadd.f32 %v5453_v1, %v2422_v28  ;;  %v2299_v39 = vpop.f32.mrb[4].mxu0 }
 0x21f   : > { %v2794_v25 = vadd.f32 %v5465_v55, %v2414_v29  ;;  %v2856_v14 = vmax.f32 %v2792_v31, 0.0  ;;  %v2857_v15 = vmax.f32 %v2793_v22, 0.0  ;;  %v4288_v44 = vadd.f32 %v2299_v39, %v5409_v8  ;;  %v4177_v48 = vpop.f32.mrb[5].mxu0 }
 0x220   : > { %v2431_v51 = vcombine.high %v2429_v4, %v2429_v4  ;;  %v2796_v24 = vadd.f32 %v5461_v18, %v2430_v37  ;;  %v2797_v10 = vadd.f32 %v5456_v5, %v2429_v4  ;;  %v2859_v53 = vmax.f32 %v2795_v20, 0.0  ;;  %v2302_v3 = vpop.f32.mrb[6].mxu0 }
 0x221   : > { %v2858_v7 = vmax.f32 %v2794_v25, 0.0  ;;  %v3048_v57 = vcombine.low %v2855_v35, %v2856_v14  ;;  %v2432_v58 = vcombine.high %v4288_v44, %v4288_v44  ;;  %v2439_v23 = vrot.slane %v4288_v44, %v5450_v40  ;;  %v4178_v61 = vpop.f32.mrb[7].mxu0 }
 0x222   : > { %v2798_v32 = vadd.f32 %v5465_v55, %v2431_v51  ;;  %v2860_v63 = vmax.f32 %v2796_v24, 0.0  ;;  %v2861_v34 = vmax.f32 %v2797_v10, 0.0  ;;  %v4289_v8 = vadd.f32 %v2302_v3, %v5411_v33 }
 0x223   : > { %v3049_v41 = vcombine.low %v2857_v15, %v2858_v7  ;;  %v3056_v46 = vrot.slane %v3048_v57, %v5450_v40  ;;  %v2446_v50 = vrot.slane %v2432_v58, %v5450_v40  ;;  %v2447_v11 = vcombine.high %v2439_v23, %v2439_v23 }
 0x224   : > { %v2862_v12 = vmax.f32 %v2798_v32, 0.0  ;;  %v3065_v13 = vcombine.low %v2859_v53, %v2860_v63  ;;  %v2449_v16 = vcombine.high %v4289_v8, %v4289_v8  ;;  %v2456_v56 = vrot.slane %v4289_v8, %v5450_v40 }
 0x225   : > { %v3063_v52 = vrot.slane %v3049_v41, %v5450_v40  ;;  %v2448_v0 = vcombine.high %v2446_v50, %v2446_v50  ;;  %v2799_v21 = vadd.f32 %v5453_v1, %v2447_v11  ;;  %v2800_v27 = vadd.f32 %v5461_v18, %v2446_v50 }
 0x226   : > { %v3066_v60 = vcombine.low %v2861_v34, %v2862_v12  ;;  %v3073_v33 = vrot.slane %v3065_v13, %v5450_v40  ;;  %v2463_v9 = vrot.slane %v2449_v16, %v5450_v40  ;;  %v2464_v28 = vcombine.high %v2456_v56, %v2456_v56  ;;  %v2307_v29 = vpop.f32.mrb[8].mxu0 }
 0x227   : > { %v3064_v31 = vcombine.low %v3056_v46, %v3063_v52  ;;  %v2801_v22 = vadd.f32 %v5456_v5, %v2448_v0  ;;  %v2863_v35 = vmax.f32 %v2799_v21, 0.0  ;;  %v2864_v4 = vmax.f32 %v2800_v27, 0.0  ;;  %v4181_v37 = vpop.f32.mrb[9].mxu0 }
 0x228   : > { %v3080_v20 = vrot.slane %v3066_v60, %v5450_v40  ;;  %v2465_v39 = vcombine.high %v2463_v9, %v2463_v9  ;;  %v2802_v25 = vadd.f32 %v5465_v55, %v2456_v56  ;;  %v2803_v14 = vadd.f32 %v5453_v1, %v2464_v28  ;;  %v2310_v15 = vpop.f32.mrb[10].mxu0 }
 0x229   : > { %v3082_v44 = vcombine.low %v2863_v35, %v2864_v4  ;;  %v2804_v48 = vadd.f32 %v5461_v18, %v2463_v9  ;;  %v2865_v51 = vmax.f32 %v2801_v22, 0.0  ;;  %v4290_v24 = vadd.f32 %v2307_v29, %v5413_v36  ;;  %v4182_v10 = vpop.f32.mrb[11].mxu0 }
 0x22a   : > { %v3081_v53 = vcombine.low %v3073_v33, %v3080_v20  ;;  %v2805_v3 = vadd.f32 %v5456_v5, %v2465_v39  ;;  %v2866_v7 = vmax.f32 %v2802_v25, 0.0  ;;  %v2867_v57 = vmax.f32 %v2803_v14, 0.0 }
 0x22b   : > { %v2868_v58 = vmax.f32 %v2804_v48, 0.0  ;;  %v2466_v23 = vcombine.high %v4290_v24, %v4290_v24  ;;  %v2473_v61 = vrot.slane %v4290_v24, %v5450_v40  ;;  %v4291_v34 = vadd.f32 %v2310_v15, %v5415_v30 }
 0x22c   : > { %v3083_v63 = vcombine.low %v2865_v51, %v2866_v7  ;;  %v4255_v36 = vpack.c.bf16 %v3081_v53, %v3064_v31  ;;  %v3090_v8 = vrot.slane %v3082_v44, %v5450_v40  ;;  %v2869_v12 = vmax.f32 %v2805_v3, 0.0 }
 0x22d   : > { %v3099_v41 = vcombine.low %v2867_v57, %v2868_v58  ;;  %v2480_v46 = vrot.slane %v2466_v23, %v5450_v40  ;;  %v2806_v50 = vadd.f32 %v5465_v55, %v2473_v61  ;;  %v2482_v13 = vcombine.high %v4291_v34, %v4291_v34 }
 0x22e   : > { %v3097_v11 = vrot.slane %v3083_v63, %v5450_v40  ;;  %v2489_v16 = vrot.slane %v4291_v34, %v5450_v40  ;;  %4257 = vmatpush3.bf16.xpose.msk.msra.mxu1 %vm5499_vm9, %v4255_v36  ;;  %v2315_v56 = vpop.f32.mrb[12].mxu0 }
 0x22f   : > { %v3107_v30 = vrot.slane %v3099_v41, %v5450_v40  ;;  %v2481_v52 = vcombine.high %v2480_v46, %v2480_v46  ;;  %v2807_v0 = vadd.f32 %v5453_v1, %v2480_v46  ;;  %v2870_v21 = vmax.f32 %v2806_v50, 0.0  ;;  %v4185_v27 = vpop.f32.mrb[13].mxu0  ;;  %4258 = vmatprep.subr.bf16.mxu1 %v4683_v6 }
 0x230   : > { %v5514_v60 = vcombine.low %v3090_v8, %v3097_v11  ;;  %v2496_v33 = vrot.slane %v2482_v13, %v5450_v40  ;;  %v2497_v9 = vcombine.high %v2489_v16, %v2489_v16  ;;  %v2809_v28 = vadd.f32 %v5456_v5, %v2489_v16  ;;  %v2318_v29 = vpop.f32.mrb[14].mxu0 }
 0x231   : > { %v2808_v31 = vadd.f32 %v5461_v18, %v2481_v52  ;;  %v2871_v22 = vmax.f32 %v2807_v0, 0.0  ;;  %v3100_v35 = vcombine.low %v2869_v12, %v2870_v21  ;;  %v4292_v4 = vadd.f32 %v2315_v56, %v5417_v38  ;;  %v4186_v37 = vpop.f32.mrb[15].mxu0 }
 0x232   : > { %v2498_v20 = vcombine.high %v2496_v33, %v2496_v33  ;;  %v2810_v39 = vadd.f32 %v5465_v55, %v2497_v9  ;;  %v2811_v25 = vadd.f32 %v5453_v1, %v2496_v33  ;;  %v2873_v14 = vmax.f32 %v2809_v28, 0.0 }
 0x233   : > { %v2872_v15 = vmax.f32 %v2808_v31, 0.0  ;;  %v3114_v44 = vrot.slane %v3100_v35, %v5450_v40  ;;  %v2499_v48 = vcombine.high %v4292_v4, %v4292_v4  ;;  %v2506_v51 = vrot.slane %v4292_v4, %v5450_v40 }
 0x234   : > { %v2812_v24 = vadd.f32 %v5461_v18, %v2498_v20  ;;  %v2874_v10 = vmax.f32 %v2810_v39, 0.0  ;;  %v2875_v53 = vmax.f32 %v2811_v25, 0.0  ;;  %v4293_v3 = vadd.f32 %v2318_v29, %v5419_v17 }
 0x235   : > { %v3115_v38 = vcombine.low %v3107_v30, %v3114_v44  ;;  %v3116_v7 = vcombine.low %v2871_v22, %v2872_v15  ;;  %v2513_v57 = vrot.slane %v2499_v48, %v5450_v40  ;;  %v2514_v58 = vcombine.high %v2506_v51, %v2506_v51 }
 0x236   : > { %v2876_v23 = vmax.f32 %v2812_v24, 0.0  ;;  %v3117_v61 = vcombine.low %v2873_v14, %v2874_v10  ;;  %v2813_v63 = vadd.f32 %v5456_v5, %v2506_v51  ;;  %v2516_v34 = vcombine.high %v4293_v3, %v4293_v3  ;;  %v2323_v36 = vpop.f32.mrb[16].mxu0 }
 0x237   : > { %v3124_v8 = vrot.slane %v3116_v7, %v5450_v40  ;;  %v2515_v41 = vcombine.high %v2513_v57, %v2513_v57  ;;  %v2814_v46 = vadd.f32 %v5465_v55, %v2514_v58  ;;  %v2523_v50 = vrot.slane %v4293_v3, %v5450_v40  ;;  %v4189_v11 = vpop.f32.mrb[17].mxu0 }
 0x238   : > { %v3131_v17 = vrot.slane %v3117_v61, %v5450_v40  ;;  %v3133_v12 = vcombine.low %v2875_v53, %v2876_v23  ;;  %v2877_v13 = vmax.f32 %v2813_v63, 0.0  ;;  %v2530_v16 = vrot.slane %v2516_v34, %v5450_v40  ;;  %v2326_v56 = vpop.f32.mrb[18].mxu0 }
 0x239   : > { %v2815_v30 = vadd.f32 %v5453_v1, %v2515_v41  ;;  %v2878_v52 = vmax.f32 %v2814_v46, 0.0  ;;  %v2531_v0 = vcombine.high %v2523_v50, %v2523_v50  ;;  %v2816_v21 = vadd.f32 %v5461_v18, %v2523_v50  ;;  %v4190_v27 = vpop.f32.mrb[19].mxu0 }
 0x23a   : > { %v5535_v33 = vcombine.low %v3124_v8, %v3131_v17  ;;  %v3141_v9 = vrot.slane %v3133_v12, %v5450_v40  ;;  %v2532_v28 = vcombine.high %v2530_v16, %v2530_v16  ;;  %v2818_v29 = vadd.f32 %v5465_v55, %v2530_v16 }
 0x23b   : > { %v2879_v31 = vmax.f32 %v2815_v30, 0.0  ;;  %v3134_v22 = vcombine.low %v2877_v13, %v2878_v52  ;;  %v2817_v35 = vadd.f32 %v5456_v5, %v2531_v0  ;;  %v2880_v4 = vmax.f32 %v2816_v21, 0.0 }
 0x23c   : > { %v2819_v37 = vadd.f32 %v5453_v1, %v2532_v28  ;;  %v2882_v20 = vmax.f32 %v2818_v29, 0.0  ;;  %v4294_v39 = vadd.f32 %v2323_v36, %v5421_v42  ;;  %v4259_v25 = vpack.c.bf16 %v3115_v38, %v5514_v60 }
 0x23d   : > { %v3148_v14 = vrot.slane %v3134_v22, %v5450_v40  ;;  %v2881_v15 = vmax.f32 %v2817_v35, 0.0  ;;  %v3150_v44 = vcombine.low %v2879_v31, %v2880_v4  ;;  %v4295_v48 = vadd.f32 %v2326_v56, %v5423_v47 }
 0x23e   : > { %v2533_v51 = vcombine.high %v4294_v39, %v4294_v39  ;;  %v2540_v24 = vrot.slane %v4294_v39, %v5450_v40  ;;  %v2883_v10 = vmax.f32 %v2819_v37, 0.0  ;;  %4261 = vmatpush3.bf16.xpose.msk.msra.mxu1 %vm5499_vm9, %v4259_v25  ;;  %v2331_v53 = vpop.f32.mrb[20].mxu0 }
 0x23f   : > { %v5548_v3 = vcombine.low %v3141_v9, %v3148_v14  ;;  %v3151_v7 = vcombine.low %v2881_v15, %v2882_v20  ;;  %v3158_v42 = vrot.slane %v3150_v44, %v5450_v40  ;;  %v2549_v60 = vcombine.high %v4295_v48, %v4295_v48  ;;  %v4193_v38 = vpop.f32.mrb[21].mxu0  ;;  %4262 = vmatprep.subr.bf16.mxu1 %v4683_v6 }
 0x240   : > { %v2547_v57 = vrot.slane %v2533_v51, %v5450_v40  ;;  %v2548_v47 = vcombine.high %v2540_v24, %v2540_v24  ;;  %v2820_v58 = vadd.f32 %v5461_v18, %v2540_v24  ;;  %v2556_v23 = vrot.slane %v4295_v48, %v5450_v40  ;;  %v2334_v61 = vpop.f32.mrb[22].mxu0 }
 0x241   : > { %v3165_v63 = vrot.slane %v3151_v7, %v5450_v40  ;;  %v2563_v34 = vrot.slane %v2549_v60, %v5450_v40  ;;  %v4296_v36 = vadd.f32 %v2331_v53, %v5425_v43  ;;  %v4297_v8 = vadd.f32 %v2334_v61, %v5427_v45  ;;  %v4194_v41 = vpop.f32.mrb[23].mxu0 }
 0x242   : > { %v2821_v46 = vadd.f32 %v5456_v5, %v2548_v47  ;;  %v2822_v50 = vadd.f32 %v5465_v55, %v2547_v57  ;;  %v2884_v11 = vmax.f32 %v2820_v58, 0.0  ;;  %v2564_v17 = vcombine.high %v2556_v23, %v2556_v23 }
 0x243   : > { %v5561_v12 = vcombine.low %v3158_v42, %v3165_v63  ;;  %v2565_v13 = vcombine.high %v2563_v34, %v2563_v34  ;;  %v2823_v16 = vadd.f32 %v5453_v1, %v2556_v23  ;;  %v2825_v56 = vadd.f32 %v5456_v5, %v2563_v34 }
 0x244   : > { %v2885_v30 = vmax.f32 %v2821_v46, 0.0  ;;  %v2886_v52 = vmax.f32 %v2822_v50, 0.0  ;;  %v3167_v0 = vcombine.low %v2883_v10, %v2884_v11  ;;  %v2824_v43 = vadd.f32 %v5461_v18, %v2564_v17 }
 0x245   : > { %v2826_v45 = vadd.f32 %v5465_v55, %v2565_v13  ;;  %v2887_v21 = vmax.f32 %v2823_v16, 0.0  ;;  %v2889_v27 = vmax.f32 %v2825_v56, 0.0  ;;  %v2566_v9 = vcombine.high %v4296_v36, %v4296_v36 }
 0x246   : > { %v3168_v28 = vcombine.low %v2885_v30, %v2886_v52  ;;  %v3175_v29 = vrot.slane %v3167_v0, %v5450_v40  ;;  %v2888_v31 = vmax.f32 %v2824_v43, 0.0  ;;  %v2573_v22 = vrot.slane %v4296_v36, %v5450_v40  ;;  %v2339_v35 = vpop.f32.mrb[24].mxu0 }
 0x247   : > { %v2890_v4 = vmax.f32 %v2826_v45, 0.0  ;;  %v2580_v37 = vrot.slane %v2566_v9, %v5450_v40  ;;  %v2583_v20 = vcombine.high %v4297_v8, %v4297_v8  ;;  %v2590_v39 = vrot.slane %v4297_v8, %v5450_v40  ;;  %v4197_v25 = vpop.f32.mrb[25].mxu0 }
 0x248   : > { %v3182_v14 = vrot.slane %v3168_v28, %v5450_v40  ;;  %v3184_v15 = vcombine.low %v2887_v21, %v2888_v31  ;;  %v2581_v44 = vcombine.high %v2573_v22, %v2573_v22  ;;  %v2827_v48 = vadd.f32 %v5453_v1, %v2573_v22  ;;  %v2342_v51 = vpop.f32.mrb[26].mxu0 }
 0x249   : > { %v3185_v24 = vcombine.low %v2889_v27, %v2890_v4  ;;  %v2582_v10 = vcombine.high %v2580_v37, %v2580_v37  ;;  %v2829_v53 = vadd.f32 %v5456_v5, %v2580_v37  ;;  %v2597_v7 = vrot.slane %v2583_v20, %v5450_v40  ;;  %v4198_v42 = vpop.f32.mrb[27].mxu0 }
 0x24a   : > { %v3183_v60 = vcombine.low %v3175_v29, %v3182_v14  ;;  %v3192_v38 = vrot.slane %v3184_v15, %v5450_v40  ;;  %v2828_v57 = vadd.f32 %v5461_v18, %v2581_v44  ;;  %v2891_v47 = vmax.f32 %v2827_v48, 0.0 }
 0x24b   : > { %v3199_v58 = vrot.slane %v3185_v24, %v5450_v40  ;;  %v2830_v23 = vadd.f32 %v5465_v55, %v2582_v10  ;;  %v2893_v61 = vmax.f32 %v2829_v53, 0.0  ;;  %v2598_v63 = vcombine.high %v2590_v39, %v2590_v39 }
 0x24c   : > { %v2892_v34 = vmax.f32 %v2828_v57, 0.0  ;;  %v2599_v36 = vcombine.high %v2597_v7, %v2597_v7  ;;  %v2832_v8 = vadd.f32 %v5461_v18, %v2597_v7  ;;  %v4263_v41 = vpack.c.bf16 %v5548_v3, %v5535_v33 }
 0x24d   : > { %v5582_v46 = vcombine.low %v3192_v38, %v3199_v58  ;;  %v2894_v50 = vmax.f32 %v2830_v23, 0.0  ;;  %v2831_v11 = vadd.f32 %v5453_v1, %v2598_v63  ;;  %v4298_v17 = vadd.f32 %v2339_v35, %v5429_v49 }
 0x24e   : > { %v3201_v13 = vcombine.low %v2891_v47, %v2892_v34  ;;  %v2833_v16 = vadd.f32 %v5456_v5, %v2599_v36  ;;  %v2896_v56 = vmax.f32 %v2832_v8, 0.0  ;;  %4265 = vmatpush3.bf16.xpose.msk.msra.mxu1 %vm5499_vm9, %v4263_v41  ;;  %v4299_v30 = vadd.f32 %v2342_v51, %v5431_v59  ;;  %v2347_v52 = vpop.f32.mrb[28].mxu0 }
 0x24f   : > { %v3202_v0 = vcombine.low %v2893_v61, %v2894_v50  ;;  %v2895_v43 = vmax.f32 %v2831_v11, 0.0  ;;  %v2600_v33 = vcombine.high %v4298_v17, %v4298_v17  ;;  %v2607_v3 = vrot.slane %v4298_v17, %v5450_v40  ;;  %4266 = vmatprep.subr.bf16.mxu1 %v4683_v6  ;;  %v4201_v45 = vpop.f32.mrb[29].mxu0 }
 0x250   : > { %v3209_v49 = vrot.slane %v3201_v13, %v5450_v40  ;;  %v2897_v21 = vmax.f32 %v2833_v16, 0.0  ;;  %v2617_v27 = vcombine.high %v4299_v30, %v4299_v30  ;;  %v2624_v9 = vrot.slane %v4299_v30, %v5450_v40  ;;  %v2350_v28 = vpop.f32.mrb[30].mxu0 }
 0x251   : > { %v3216_v29 = vrot.slane %v3202_v0, %v5450_v40  ;;  %v3218_v31 = vcombine.low %v2895_v43, %v2896_v56  ;;  %v2614_v59 = vrot.slane %v2600_v33, %v5450_v40  ;;  %v2615_v22 = vcombine.high %v2607_v3, %v2607_v3  ;;  %v4202_v35 = vpop.f32.mrb[31].mxu0 }
 0x252   : > { %v2834_v4 = vadd.f32 %v5465_v55, %v2607_v3  ;;  %v2631_v37 = vrot.slane %v2617_v27, %v5450_v40  ;;  %v2838_v20 = vadd.f32 %v5465_v55, %v2624_v9  ;;  %v4267_v39 = vpack.c.bf16 %v3183_v60, %v5561_v12 }
 0x253   : > { %v3217_v25 = vcombine.low %v3209_v49, %v3216_v29  ;;  %v3226_v14 = vrot.slane %v3218_v31, %v5450_v40  ;;  %v2616_v15 = vcombine.high %v2614_v59, %v2614_v59  ;;  %v2835_v44 = vadd.f32 %v5453_v1, %v2615_v22 }
 0x254   : > { %v2836_v48 = vadd.f32 %v5461_v18, %v2614_v59  ;;  %v2898_v51 = vmax.f32 %v2834_v4, 0.0  ;;  %v2632_v24 = vcombine.high %v2631_v37, %v2631_v37  ;;  %v2839_v10 = vadd.f32 %v5453_v1, %v2631_v37 }
 0x255   : > { %v2837_v53 = vadd.f32 %v5456_v5, %v2616_v15  ;;  %v2899_v7 = vmax.f32 %v2835_v44, 0.0  ;;  %v2902_v42 = vmax.f32 %v2838_v20, 0.0  ;;  %v4300_v38 = vadd.f32 %v2347_v52, %v5439_v54 }
 0x256   : > { %v2900_v57 = vmax.f32 %v2836_v48, 0.0  ;;  %v3219_v12 = vcombine.low %v2897_v21, %v2898_v51  ;;  %v2840_v60 = vadd.f32 %v5461_v18, %v2632_v24  ;;  %v2903_v47 = vmax.f32 %v2839_v10, 0.0  ;;  %4269 = vmatpush3.bf16.xpose.msk.msra.mxu1 %vm5499_vm9, %v4267_v39  ;;  %v2355_v58 = vpop.f32.mrb[32].mxu0 }
 0x257   : > { %v2901_v23 = vmax.f32 %v2837_v53, 0.0  ;;  %v2633_v61 = vcombine.high %v4300_v38, %v4300_v38  ;;  %v2640_v63 = vrot.slane %v4300_v38, %v5450_v40  ;;  %v4301_v34 = vadd.f32 %v2350_v28, %v5441_v26  ;;  %4270 = vmatprep.subr.bf16.mxu1 %v4683_v6  ;;  %v4205_v36 = vpop.f32.mrb[33].mxu0 }
 0x258   : > { %v3233_v54 = vrot.slane %v3219_v12, %v5450_v40  ;;  %v3235_v8 = vcombine.low %v2899_v7, %v2900_v57  ;;  %v2904_v41 = vmax.f32 %v2840_v60, 0.0  ;;  %v4271_v50 = vpack.c.bf16 %v3217_v25, %v5582_v46  ;;  %v2358_v11 = vpop.f32.mrb[34].mxu0 }
 0x259   : > { %v3236_v17 = vcombine.low %v2901_v23, %v2902_v42  ;;  %v2647_v13 = vrot.slane %v2633_v61, %v5450_v40  ;;  %v2648_v16 = vcombine.high %v2640_v63, %v2640_v63  ;;  %v2841_v56 = vadd.f32 %v5456_v5, %v2640_v63  ;;  %v4206_v30 = vpop.f32.mrb[35].mxu0 }
 0x25a   : > { %v3234_v52 = vcombine.low %v3226_v14, %v3233_v54  ;;  %v3243_v26 = vrot.slane %v3235_v8, %v5450_v40  ;;  %v3252_v0 = vcombine.low %v2903_v47, %v2904_v41  ;;  %v2650_v43 = vcombine.high %v4301_v34, %v4301_v34 }
 0x25b   : > { %v3250_v33 = vrot.slane %v3236_v17, %v5450_v40  ;;  %v2649_v3 = vcombine.high %v2647_v13, %v2647_v13  ;;  %v2842_v45 = vadd.f32 %v5465_v55, %v2648_v16  ;;  %v2843_v46 = vadd.f32 %v5453_v1, %v2647_v13 }
 0x25c   : > { %v3260_v49 = vrot.slane %v3252_v0, %v5450_v40  ;;  %v2905_v21 = vmax.f32 %v2841_v56, 0.0  ;;  %v2657_v27 = vrot.slane %v4301_v34, %v5450_v40  ;;  %v2664_v9 = vrot.slane %v2650_v43, %v5450_v40 }
 0x25d   : > { %v3251_v28 = vcombine.low %v3243_v26, %v3250_v33  ;;  %v2844_v29 = vadd.f32 %v5461_v18, %v2649_v3  ;;  %v2906_v31 = vmax.f32 %v2842_v45, 0.0  ;;  %v2907_v59 = vmax.f32 %v2843_v46, 0.0 }
 0x25e   : > { %v2665_v22 = vcombine.high %v2657_v27, %v2657_v27  ;;  %v2666_v35 = vcombine.high %v2664_v9, %v2664_v9  ;;  %v2845_v4 = vadd.f32 %v5456_v5, %v2657_v27  ;;  %4273 = vmatpush3.bf16.xpose.msk.msra.mxu1 %vm5499_vm9, %v4271_v50  ;;  %v4302_v37 = vadd.f32 %v2355_v58, %v5443_v19  ;;  %v2935_v9 = vld [vmem:[%s5693_s6] sm:$0xff] }
 0x25f   : > { %v2908_v20 = vmax.f32 %v2844_v29, 0.0  ;;  %v3253_v39 = vcombine.low %v2905_v21, %v2906_v31  ;;  %v4303_v25 = vadd.f32 %v2358_v11, %v5445_v62  ;;  %4274 = vmatprep.subr.bf16.mxu1 %v4683_v6  ;;  %v4275_v14 = vpack.c.bf16 %v3251_v28, %v3234_v52 }
 0x260   : > { %v2846_v15 = vadd.f32 %v5465_v55, %v2665_v22  ;;  %v2847_v44 = vadd.f32 %v5453_v1, %v2666_v35  ;;  %v2909_v48 = vmax.f32 %v2845_v4, 0.0  ;;  %v2667_v51 = vcombine.high %v4302_v37, %v4302_v37  ;;  %v3429_v22 = vpop.permute.xlu1 %3428 }
 0x261   : > { %v3267_v24 = vrot.slane %v3253_v39, %v5450_v40  ;;  %v3269_v10 = vcombine.low %v2907_v59, %v2908_v20  ;;  %v2674_v53 = vrot.slane %v4302_v37, %v5450_v40  ;;  %v2684_v7 = vcombine.high %v4303_v25, %v4303_v25  ;;  %v3433_v39 = vld [vmem:[%s5696_s9] sm:$0xf] }
 0x262   : > { %v2910_v19 = vmax.f32 %v2846_v15, 0.0  ;;  %v2911_v42 = vmax.f32 %v2847_v44, 0.0  ;;  %v2681_v38 = vrot.slane %v2667_v51, %v5450_v40  ;;  %v2691_v62 = vrot.slane %v4303_v25, %v5450_v40 }
 0x263   : > { %v3268_v57 = vcombine.low %v3260_v49, %v3267_v24  ;;  %v3277_v12 = vrot.slane %v3269_v10, %v5450_v40  ;;  %v2682_v60 = vcombine.high %v2674_v53, %v2674_v53  ;;  %v2848_v47 = vadd.f32 %v5461_v18, %v2674_v53 }
 0x264   : > { %v3270_v58 = vcombine.low %v2909_v48, %v2910_v19  ;;  %v2683_v23 = vcombine.high %v2681_v38, %v2681_v38  ;;  %v2850_v61 = vadd.f32 %v5465_v55, %v2681_v38  ;;  %v2698_v63 = vrot.slane %v2684_v7, %v5450_v40 }
 0x265   : > { %v2849_v34 = vadd.f32 %v5456_v5, %v2682_v60  ;;  %v2912_v36 = vmax.f32 %v2848_v47, 0.0  ;;  %v2699_v54 = vcombine.high %v2691_v62, %v2691_v62  ;;  %v2852_v8 = vadd.f32 %v5461_v18, %v2691_v62 }
 0x266   : > { %v3284_v41 = vrot.slane %v3270_v58, %v5450_v40  ;;  %v2851_v50 = vadd.f32 %v5453_v1, %v2683_v23  ;;  %v2914_v11 = vmax.f32 %v2850_v61, 0.0  ;;  %v2854_v17 = vadd.f32 %v5465_v55, %v2698_v63  ;;  %4277 = vmatpush3.bf16.xpose.msk.msra.mxu1 %vm5499_vm9, %v4275_v14 }
 0x267   : > { %v2913_v13 = vmax.f32 %v2849_v34, 0.0  ;;  %v3286_v16 = vcombine.low %v2911_v42, %v2912_v36  ;;  %v2853_v56 = vadd.f32 %v5456_v5, %v2699_v54  ;;  %4278 = vmatprep.subr.bf16.mxu1 %v4683_v6  ;;  %v2916_v26 = vmax.f32 %v2852_v8, 0.0 }
 0x268   : > { %v3285_v30 = vcombine.low %v3277_v12, %v3284_v41  ;;  %v2915_v52 = vmax.f32 %v2851_v50, 0.0  ;;  %v2918_v18 = vmax.f32 %v2854_v17, 0.0 }
 0x269   : > { %v3287_v0 = vcombine.low %v2913_v13, %v2914_v11  ;;  %v2917_v43 = vmax.f32 %v2853_v56, 0.0  ;;  %v3294_v3 = vrot.slane %v3286_v16, %v5450_v40 }
 0x26a   : > { %v3303_v33 = vcombine.low %v2915_v52, %v2916_v26  ;;  %v4279_v1 = vpack.c.bf16 %v3285_v30, %v3268_v57 }
 0x26b   : > { %v3301_v55 = vrot.slane %v3287_v0, %v5450_v40  ;;  %v3304_v45 = vcombine.low %v2917_v43, %v2918_v18 }
 0x26c   : > { %v3311_v46 = vrot.slane %v3303_v33, %v5450_v40 }
 0x26d   : > { %v3302_v49 = vcombine.low %v3294_v3, %v3301_v55  ;;  %v3318_v5 = vrot.slane %v3304_v45, %v5450_v40  ;;  %v2978_v40 = vpop.f32.mrb[36].mxu1 }
 0x26e   : > { %4281 = vmatpush3.bf16.xpose.msk.msra.mxu1 %vm5499_vm9, %v4279_v1  ;;  %v4211_v28 = vpop.f32.mrb[37].mxu1 }
 0x26f   : > { %v3319_v21 = vcombine.low %v3311_v46, %v3318_v5  ;;  %4282 = vmatprep.subr.bf16.mxu1 %v4683_v6  ;;  %v2981_v29 = vpop.f32.mrb[38].mxu1 }
 0x270   : > { %v4212_v6 = vpop.f32.mrb[39].mxu1 }
 0x271   : > { %v4283_v27 = vpack.c.bf16 %v3319_v21, %v3302_v49 }
 0x276   : > { %4285 = vmatpush3.bf16.xpose.msk.msra.mxu1 %vm5499_vm9, %v4283_v27 }
 0x277   : > { %4248 = vmatprep.subr.bf16.mxu1 %v4680_v2 }
 0x27d   : > { %4246 = vmatmul.mubr.msk.f32.vlgmr.msra.gmra.mrb[40].mxu1 %vm600_vm4, %v2935_v9 }
 0x27e   : > { %4250 = vmatprep.mubr.msk.bf16.mxu1 %vm4681_vm1, %v4680_v2  ;;  %v3439_v2 = vpop.permute.xlu1 %3438 }
 0x350   : > { %v3421_v31 = vpop.f32.mrb[40].mxu1 }
 0x351   : > { %v3422_v59 = vadd.f32 %v3421_v31, %v2978_v40  ;;  %v4247_v32 = vpop.f32.mrb[41].mxu1 }
 0x353   : > { %v3431_v35 = vadd.f32 %v3429_v22, %v3422_v59 }
 0x355   : > { %v3432_v4 = vmax.f32 %v3431_v35, 0.0 }
 0x357   : > { %v3434_v37 = vpack.c.bf16 %v3432_v4, %v3432_v4 }
 0x359   : > { %v3447_v20 = vsel %vm3445_vm10, %v3434_v37, 0 }
 0x35a   : > { %4249 = vmatpush3.bf16.msra.mxu1 %v3447_v20 }
 0x35d   : > { %4251 = vmatmul.mubr.msk.bf16.vlgmr.msra.gmra.mrb[44].mxu1 %vm3441_vm11, %v3433_v39 }
 0x430   : > { %v3483_v25 = vpop.f32.mrb[44].mxu1 }
 0x431   : > { %v3484_v14 = vadd.f32 %v3483_v25, %v3439_v2  ;;  %v4252_v15 = vpop.f32.mrb[45].mxu1 }
 0x432   : > { %v3486_v44 = vpop.f32.mrb[46].mxu1 }
 0x433   : > { %v3489_v48 = vmax.f32 %v3484_v14, 0.0  ;;  %v4253_v51 = vpop.f32.mrb[47].mxu1 }
 0x435   : > { %3490 = vst [vmem:[%s451_s24] sm:$0xff] %v3489_v48 }
 0x436 PF: > { %s21_s21 = sadd.s32 1, %s4678_s21   ;;  %s5701_s17 = smov %s4670_s19 }
 0x437   : > { %p18_p7 = scmp.ge.s32.totalorder %s21_s21, 6   ;;  %s5702_s18 = smov %s4674_s20 }
 0x438   : > { %s5703_s19 = smov %s5706_s22  ;;  %s5704_s20 = smov %s5710_s23 }
 0x439   :  { %20 = sbr.rel (!%p18_p7) target bundleno = 3 (0x3), region = 105 }

</bundles_post_ra>
